<compile_context>
chip_gen: v7x
topology: tpu7x:2x2x1
jax: 0.10.0
libtpu: 0.0.40
codegen_flags: <defaults>
</compile_context>

<pallas_src>
import numpy as np
import jax
import jax.numpy as jnp
from jax.experimental import pallas as pl
from jax.experimental.pallas import tpu as pltpu


def _global_filter_kernel(x_ref, wr_ref, wi_ref, br_ref, bi_ref, ir_ref, ii_ref,
                          o_ref):
    f32 = jnp.float32
    x = x_ref[0]          # (a*b, TC)   one batch, TC channels (lane-dense)
    wr = wr_ref[...]      # (a*wf, TC)  filter real part for this channel tile
    wi = wi_ref[...]      # (a*wf, TC)  filter imag part for this channel tile

    # Forward 2-D ortho rfft2 as dense contractions over flattened space.
    xr = jnp.dot(br_ref[...], x, preferred_element_type=f32)   # (a*wf, TC)
    xi = jnp.dot(bi_ref[...], x, preferred_element_type=f32)   # (a*wf, TC)

    # Learned complex spectral filter (elementwise on VPU).
    zr = xr * wr - xi * wi
    zi = xr * wi + xi * wr

    # Inverse 2-D ortho irfft2 (Hermitian-weighted cos/sin bases).
    o_ref[0] = (jnp.dot(ir_ref[...], zr, preferred_element_type=f32)
                + jnp.dot(ii_ref[...], zi, preferred_element_type=f32))


def _dft_bases(a, b):
    """Dense real-valued ortho 2-D (i)rDFT bases over flattened spatial dims.

    k = k1*wf + k2 indexes frequencies (matching complex_weight.reshape(a*wf, C)),
    n = n1*b + n2 indexes spatial positions (matching x.reshape(a*b, C)).
    """
    wf = b // 2 + 1
    k1 = np.arange(a).reshape(a, 1, 1, 1)
    k2 = np.arange(wf).reshape(1, wf, 1, 1)
    n1 = np.arange(a).reshape(1, 1, a, 1)
    n2 = np.arange(b).reshape(1, 1, 1, b)
    ang = 2.0 * np.pi * (k1 * n1 / a + k2 * n2 / b)       # (a, wf, a, b)
    ang = ang.reshape(a * wf, a * b)
    s = 1.0 / np.sqrt(a * b)

    br = np.cos(ang) * s                                   # rfft2 real part
    bi = -np.sin(ang) * s                                  # rfft2 imag part

    coef = np.full((wf,), 2.0)                             # Hermitian doubling
    coef[0] = 1.0
    if b % 2 == 0:
        coef[wf - 1] = 1.0
    coefk = np.tile(coef, a)                               # coef at k = k1*wf + k2

    ir = (coefk[None, :] * np.cos(ang.T)) * s              # (a*b, a*wf)
    ii = (-coefk[None, :] * np.sin(ang.T)) * s             # (a*b, a*wf)

    f = lambda m: jnp.asarray(m, dtype=jnp.float32)
    return f(br), f(bi), f(ir), f(ii)


def global_filter(x, complex_weight, *, lane_tile=128):
    """x: (B, C, a, b); complex_weight: (h, w, C, 2) as in the PyTorch module."""
    B, C, a, b = x.shape
    x = x.astype(jnp.float32)
    wf = b // 2 + 1
    awf, ab = a * wf, a * b

    h_w, w_w, dim, two = complex_weight.shape
    assert dim == C and two == 2
    if (h_w, w_w) != (a, wf):
        # TODO(synk): jax.image.resize(bilinear) may differ slightly from
        # F.interpolate(mode='bilinear', align_corners=False) on downsampling.
        complex_weight = jax.image.resize(
            complex_weight.astype(jnp.float32), (a, wf, C, 2), method='bilinear')
    complex_weight = complex_weight.astype(jnp.float32)

    # Channel-last layout; pad channels so the lane dim is a multiple of 128.
    tc = lane_tile
    c_pad = ((C + tc - 1) // tc) * tc
    x_nhwc = jnp.transpose(x, (0, 2, 3, 1)).reshape(B, ab, C)
    if c_pad != C:
        x_nhwc = jnp.pad(x_nhwc, ((0, 0), (0, 0), (0, c_pad - C)))

    w_flat = complex_weight.reshape(awf, C, 2)
    wr = w_flat[..., 0]
    wi = w_flat[..., 1]
    if c_pad != C:
        wr = jnp.pad(wr, ((0, 0), (0, c_pad - C)))
        wi = jnp.pad(wi, ((0, 0), (0, c_pad - C)))

    br, bi, ir, ii = _dft_bases(a, b)

    grid = (B, c_pad // tc)
    const_spec = lambda shape: pl.BlockSpec(shape, lambda ib, ic: (0, 0))

    # Advisory cost hint: 4 matmuls + complex multiply per (batch, channel-tile).
    flops = 8 * awf * ab * c_pad * B + 6 * awf * c_pad * B
    bytes_accessed = 4 * (2 * B * ab * c_pad + 2 * awf * c_pad + 4 * awf * ab)

    out = pl.pallas_call(
        _global_filter_kernel,
        out_shape=jax.ShapeDtypeStruct((B, ab, c_pad), jnp.float32),
        grid_spec=pltpu.PrefetchScalarGridSpec(
            num_scalar_prefetch=0,
            grid=grid,
            in_specs=[
                pl.BlockSpec((1, ab, tc), lambda ib, ic: (ib, 0, ic)),   # x
                pl.BlockSpec((awf, tc), lambda ib, ic: (0, ic)),         # wr
                pl.BlockSpec((awf, tc), lambda ib, ic: (0, ic)),         # wi
                const_spec((awf, ab)),   # br (resident)
                const_spec((awf, ab)),   # bi (resident)
                const_spec((ab, awf)),   # ir (resident)
                const_spec((ab, awf)),   # ii (resident)
            ],
            out_specs=pl.BlockSpec((1, ab, tc), lambda ib, ic: (ib, 0, ic)),
        ),
        compiler_params=pltpu.CompilerParams(
            dimension_semantics=("parallel", "parallel")),
        cost_estimate=pl.CostEstimate(
            flops=flops, transcendentals=0, bytes_accessed=bytes_accessed),
    )(x_nhwc, wr, wi, br, bi, ir, ii)

    y = out[:, :, :C].reshape(B, a, b, C)
    return jnp.transpose(y, (0, 3, 1, 2))


if __name__ == "__main__":
    # Filter grid (h, w) matches (a, b//2 + 1) so the interpolation branch is
    # not taken, mirroring the common GFNet configuration.
    B, C, a, b = 2, 4, 16, 16
    h, w = a, b // 2 + 1

    key = jax.random.PRNGKey(0)
    kx, kw = jax.random.split(key)
    x = jax.random.normal(kx, (B, C, a, b), dtype=jnp.float32)
    complex_weight = jax.random.normal(kw, (h, w, C, 2), dtype=jnp.float32) * 0.02

    y = jax.block_until_ready(global_filter(x, complex_weight))

    # Pure-JAX reference mirroring the PyTorch forward.
    xp = jnp.transpose(x, (0, 2, 3, 1)).astype(jnp.float32)          # (B, a, b, C)
    xf = jnp.fft.rfftn(xp, axes=(1, 2), norm='ortho')                # (B, a, w, C)
    wc = complex_weight[..., 0] + 1j * complex_weight[..., 1]        # (h, w, C)
    yref = jnp.fft.irfftn(xf * wc[None], s=(a, b), axes=(1, 2), norm='ortho')
    yref = jnp.transpose(yref, (0, 3, 1, 2))                         # (B, C, a, b)

    err = float(jnp.max(jnp.abs(y - yref)))
    assert jnp.allclose(y, yref, atol=2e-4, rtol=2e-3), f"max abs err = {err}"
    print("KERNEL_OK")
</pallas_src>

<mosaic_0001>
module attributes {stable_mosaic.version = 11 : i64} {
  func.func @_global_filter_kernel(%arg0: i32, %arg1: i32, %arg2: memref<1x256x128xf32, #tpu.memory_space<vmem>>, %arg3: memref<144x128xf32, #tpu.memory_space<vmem>>, %arg4: memref<144x128xf32, #tpu.memory_space<vmem>>, %arg5: memref<144x256xf32, #tpu.memory_space<vmem>>, %arg6: memref<144x256xf32, #tpu.memory_space<vmem>>, %arg7: memref<256x144xf32, #tpu.memory_space<vmem>>, %arg8: memref<256x144xf32, #tpu.memory_space<vmem>>, %arg9: memref<1x256x128xf32, #tpu.memory_space<vmem>>) attributes {dimension_semantics = [#tpu.dimension_semantics<parallel>, #tpu.dimension_semantics<parallel>], iteration_bounds = array<i64: 2, 1>, scalar_prefetch = 0 : i64, scratch_operands = 0 : i64, tpu.core_type = #tpu.core_type<tc>, window_params = [{transform_indices = @transform_0, window_bounds = array<i64: 1, 256, 128>}, {transform_indices = @transform_1, window_bounds = array<i64: 144, 128>}, {transform_indices = @transform_2, window_bounds = array<i64: 144, 128>}, {pipeline_mode = #tpu.pipeline_mode<synchronous>, transform_indices = @transform_3, window_bounds = array<i64: 144, 256>}, {pipeline_mode = #tpu.pipeline_mode<synchronous>, transform_indices = @transform_4, window_bounds = array<i64: 144, 256>}, {pipeline_mode = #tpu.pipeline_mode<synchronous>, transform_indices = @transform_5, window_bounds = array<i64: 256, 144>}, {pipeline_mode = #tpu.pipeline_mode<synchronous>, transform_indices = @transform_6, window_bounds = array<i64: 256, 144>}, {transform_indices = @transform_7, window_bounds = array<i64: 1, 256, 128>}]} {
    %c0 = arith.constant 0 : index
    %c0_0 = arith.constant 0 : index
    %c0_1 = arith.constant 0 : index
    %0 = vector.load %arg2[%c0, %c0_0, %c0_1] : memref<1x256x128xf32, #tpu.memory_space<vmem>>, vector<1x256x128xf32>
    %1 = vector.shape_cast %0 : vector<1x256x128xf32> to vector<256x128xf32>
    %c0_2 = arith.constant 0 : index
    %c0_3 = arith.constant 0 : index
    %2 = vector.load %arg3[%c0_2, %c0_3] : memref<144x128xf32, #tpu.memory_space<vmem>>, vector<144x128xf32>
    %c0_4 = arith.constant 0 : index
    %c0_5 = arith.constant 0 : index
    %3 = vector.load %arg4[%c0_4, %c0_5] : memref<144x128xf32, #tpu.memory_space<vmem>>, vector<144x128xf32>
    %c0_6 = arith.constant 0 : index
    %c0_7 = arith.constant 0 : index
    %4 = vector.load %arg5[%c0_6, %c0_7] : memref<144x256xf32, #tpu.memory_space<vmem>>, vector<144x256xf32>
    %cst = arith.constant dense<0.000000e+00> : vector<144x128xf32>
    %5 = tpu.matmul %4, %1, %cst {dimension_numbers = #tpu.dot_dimension_numbers<[1], [0], [0], [1], [0, 0, 1, 1], [], []>} : vector<144x256xf32>, vector<256x128xf32>, vector<144x128xf32> -> vector<144x128xf32>
    %c0_8 = arith.constant 0 : index
    %c0_9 = arith.constant 0 : index
    %6 = vector.load %arg6[%c0_8, %c0_9] : memref<144x256xf32, #tpu.memory_space<vmem>>, vector<144x256xf32>
    %cst_10 = arith.constant dense<0.000000e+00> : vector<144x128xf32>
    %7 = tpu.matmul %6, %1, %cst_10 {dimension_numbers = #tpu.dot_dimension_numbers<[1], [0], [0], [1], [0, 0, 1, 1], [], []>} : vector<144x256xf32>, vector<256x128xf32>, vector<144x128xf32> -> vector<144x128xf32>
    %8 = arith.mulf %5, %2 : vector<144x128xf32>
    %9 = arith.mulf %7, %3 : vector<144x128xf32>
    %10 = arith.subf %8, %9 : vector<144x128xf32>
    %11 = arith.mulf %5, %3 : vector<144x128xf32>
    %12 = arith.mulf %7, %2 : vector<144x128xf32>
    %13 = arith.addf %11, %12 : vector<144x128xf32>
    %c0_11 = arith.constant 0 : index
    %c0_12 = arith.constant 0 : index
    %14 = vector.load %arg7[%c0_11, %c0_12] : memref<256x144xf32, #tpu.memory_space<vmem>>, vector<256x144xf32>
    %cst_13 = arith.constant dense<0.000000e+00> : vector<256x128xf32>
    %15 = tpu.matmul %14, %10, %cst_13 {dimension_numbers = #tpu.dot_dimension_numbers<[1], [0], [0], [1], [0, 0, 1, 1], [], []>} : vector<256x144xf32>, vector<144x128xf32>, vector<256x128xf32> -> vector<256x128xf32>
    %c0_14 = arith.constant 0 : index
    %c0_15 = arith.constant 0 : index
    %16 = vector.load %arg8[%c0_14, %c0_15] : memref<256x144xf32, #tpu.memory_space<vmem>>, vector<256x144xf32>
    %cst_16 = arith.constant dense<0.000000e+00> : vector<256x128xf32>
    %17 = tpu.matmul %16, %13, %cst_16 {dimension_numbers = #tpu.dot_dimension_numbers<[1], [0], [0], [1], [0, 0, 1, 1], [], []>} : vector<256x144xf32>, vector<144x128xf32>, vector<256x128xf32> -> vector<256x128xf32>
    %18 = arith.addf %15, %17 : vector<256x128xf32>
    %c0_17 = arith.constant 0 : index
    %c0_18 = arith.constant 0 : index
    %c0_19 = arith.constant 0 : index
    %19 = vector.load %arg9[%c0_17, %c0_18, %c0_19] : memref<1x256x128xf32, #tpu.memory_space<vmem>>, vector<1x256x128xf32>
    %20 = vector.shape_cast %19 : vector<1x256x128xf32> to vector<256x128xf32>
    %21 = vector.shape_cast %18 : vector<256x128xf32> to vector<1x256x128xf32>
    tpu.vector_store %arg9[%c0_17, %c0_18, %c0_19], %21 {strides = array<i32>} : memref<1x256x128xf32, #tpu.memory_space<vmem>>, vector<1x256x128xf32>,
    return
  }
  func.func @transform_0(%arg0: i32, %arg1: i32) -> (i32, i32, i32) {
    %c0_i32 = arith.constant 0 : i32
    %c0_i32_0 = arith.constant 0 : i32
    return %arg0, %c0_i32, %arg1 : i32, i32, i32
  }
  func.func @transform_1(%arg0: i32, %arg1: i32) -> (i32, i32) {
    %c0_i32 = arith.constant 0 : i32
    %c0_i32_0 = arith.constant 0 : i32
    return %c0_i32, %arg1 : i32, i32
  }
  func.func @transform_2(%arg0: i32, %arg1: i32) -> (i32, i32) {
    %c0_i32 = arith.constant 0 : i32
    %c0_i32_0 = arith.constant 0 : i32
    return %c0_i32, %arg1 : i32, i32
  }
  func.func @transform_3(%arg0: i32, %arg1: i32) -> (i32, i32) {
    %c0_i32 = arith.constant 0 : i32
    %c0_i32_0 = arith.constant 0 : i32
    %c0_i32_1 = arith.constant 0 : i32
    return %c0_i32, %c0_i32_0 : i32, i32
  }
  func.func @transform_4(%arg0: i32, %arg1: i32) -> (i32, i32) {
    %c0_i32 = arith.constant 0 : i32
    %c0_i32_0 = arith.constant 0 : i32
    %c0_i32_1 = arith.constant 0 : i32
    return %c0_i32, %c0_i32_0 : i32, i32
  }
  func.func @transform_5(%arg0: i32, %arg1: i32) -> (i32, i32) {
    %c0_i32 = arith.constant 0 : i32
    %c0_i32_0 = arith.constant 0 : i32
    %c0_i32_1 = arith.constant 0 : i32
    return %c0_i32, %c0_i32_0 : i32, i32
  }
  func.func @transform_6(%arg0: i32, %arg1: i32) -> (i32, i32) {
    %c0_i32 = arith.constant 0 : i32
    %c0_i32_0 = arith.constant 0 : i32
    %c0_i32_1 = arith.constant 0 : i32
    return %c0_i32, %c0_i32_0 : i32, i32
  }
  func.func @transform_7(%arg0: i32, %arg1: i32) -> (i32, i32, i32) {
    %c0_i32 = arith.constant 0 : i32
    %c0_i32_0 = arith.constant 0 : i32
    return %arg0, %c0_i32, %arg1 : i32, i32, i32
  }
}

</mosaic_0001>

<bundles_post_ra>
// kernel: tpu_custom_call.1
= control target key start
LH: loop header
LB: loop body
LE: loop exit
PB: predicated region body
PF: predicated region fallthrough
CT: control target
= control target key end

     0   :  { %12 = vsyncpa [#allocation3], 0  ;;  %s3312_s0 = inlined_call_operand.vmem [shape: f32[2,256,128], index: 0, kind: input, shape index: {}]   ;;  %s3313_s1 = inlined_call_operand.vmem [shape: f32[144,128], index: 1, kind: input, shape index: {}]   ;;  %s3314_s2 = inlined_call_operand.hbm [shape: f32[144,128], index: 2, kind: input, shape index: {}]   ;;  %s3315_s3 = inlined_call_operand.vmem [shape: f32[144,256], index: 3, kind: input, shape index: {}]   ;;  %s3316_s4 = inlined_call_operand.vmem [shape: f32[144,256], index: 4, kind: input, shape index: {}]   ;;  %s3317_s5 = inlined_call_operand.vmem [shape: f32[256,144], index: 5, kind: input, shape index: {}]   ;;  %s3318_s6 = inlined_call_operand.vmem [shape: f32[256,144], index: 6, kind: input, shape index: {}]   ;;  %s3319_s7 = inlined_call_operand.hbm [shape: f32[2,256,128], index: 7, kind: output, shape index: {}]  }
   0x1   :  { %13 = vsyncpa [#allocation4], 0 }
   0x2   :  { %15 = vsyncpa [#allocation4 + $0x1], 0  ;;  %s2318_s24 = smov 0   ;;  %s2320_s25 = smov 0  }
   0x3   :  { %s2322_s26 = smov 0   ;;  %s2324_s27 = smov 0  }
   0x4   :  { %s2326_s28 = smov 0   ;;  %s2328_s29 = smov 0  }
   0x5 LB: > { %s1824_s30 = sadd.s32 4294967295, %s2269_s29   ;;  %s1825_s8 = sadd.s32 4294967294, %s2269_s29   ;;  %s2269_s29 = sphi %s2328_s29, %s21_s29   ;;  %s2265_s28 = sphi %s2326_s28, %s3337_s28   ;;  %s2261_s27 = sphi %s2324_s27, %s3336_s27   ;;  %s2257_s26 = sphi %s2322_s26, %s3335_s26   ;;  %s2253_s25 = sphi %s2320_s25, %s3334_s25   ;;  %s2249_s24 = sphi %s2318_s24, %s3333_s24  }
   0x6   : > { %s33_s9 = sadd.s32 1, %s2265_s28  ;;  %s206_s10 = sadd.s32 1, %s2257_s26 }
   0x7   : > { %p35_p0 = scmp.ge.s32.totalorder %s33_s9, 2  ;;  %p216_p1 = scmp.ne.s32.totalorder %s2257_s26, %s2253_s25 }
   0x8   : > { %p217_p2 = scmp.eq.s32.totalorder %s1824_s30, 1  ;;  %p222_p3 = scmp.ne.s32.totalorder %s2253_s25, %s2249_s24 }
   0x9   : > { %s3339_s9 = smov (%p35_p0, %s33_s9), 0  ;;  %p223_p5 = scmp.eq.s32.totalorder %s1825_s8, 1 }
   0xa   : > { %p2358_p4 = por %p217_p2, %p216_p1  ;;  %s201_s12 = ssub.s32 %s2265_s28, %s3339_s9 }
   0xb   : > { %p1826_p6 = scmp.ge.s32.totalorder %s2269_s29, 1  ;;  %p204_p7 = scmp.eq.s32.totalorder %s201_s12, 0 }
   0xc   : > { %s3324_s11 = scalar_select %p2358_p4, 1, 0 }
   0xd   : > { %p2365_p8 = por %p223_p5, %p222_p3  ;;  %p230_p9 = scmp.lt.s32.totalorder %s2269_s29, 3 }
   0xe   : > { %s2371_s14 = scalar_select %p204_p7, %s2257_s26, %s206_s10  }
   0xf   : > { %s3325_s13 = scalar_select %p2365_p8, 1, 0 }
  0x10   : > { %p2373_p10 = pnand %p1826_p6, %p230_p9  ;;  %p2377_p11 = scmp.eq.s32.totalorder %s1824_s30, 0 }
  0x11   : > { %s2271_s17 = smov [#allocation2]   ;;  %s2159_s22 = scalar_lea.hbm %s3314_s2, 2304 }
  0x12   : > { %s3326_s15 = scalar_select %p2373_p10, 1, 0 }
  0x13   : > { %s3327_s16 = scalar_select %p2377_p11, 1, 0 }
  0x14   : > { %p2094_p12 = pneg %p2373_p10  ;;  %s251_s18 = sshll.u32 %s2271_s17, 4  ;;  %s252_s18 = int_to_ptr.vmem [resolvable:$true] %s251_s18 }
  0x15   : > { %p2160_p0 = scmp.ne.s32.totalorder %s3314_s2, %s2159_s22  ;;  %p2166_p5 = scmp.lt.u32.totalorder %s2159_s22, %s3314_s2 }
  0x16   : > { %p2385_p13 = pnand %p2377_p11, %p2094_p12 }
  0x18   : > { %p2161_p1 = pneg %p2385_p13 }
  0x1a   : > { %p2162_p2 = pnand %p2161_p1, %p2160_p0 }
  0x1c   : > { %p2163_p3 = pneg %p2162_p2 }
  0x1e   : > { %p2168_p6 = pnand %p2166_p5, %p2163_p3 }
  0x20   : > { %2171 = shalt.err (!%p2168_p6)
}
  0x21   : > { %s2172_s12 = scalar_lea.vmem %s252_s18, 2304  ;;  %p2180_p8 = scmp.lt.s32.totalorder %s252_s18, %s252_s18 }
  0x22   : > { %p2173_p7 = scmp.ne.s32.totalorder %s252_s18, %s2172_s12  ;;  %p2181_p4 = scmp.lt.s32.totalorder %s2172_s12, %s2172_s12 }
  0x24   : > { %p2175_p9 = pnand %p2173_p7, %p2161_p1  ;;  %p2182_p11 = por %p2181_p4, %p2180_p8 }
  0x26   : > { %p2176_p12 = pneg %p2175_p9 }
  0x28   : > { %p2183_p10 = pnand %p2182_p11, %p2176_p12 }
  0x2a   : > { %2186 = shalt.err (!%p2183_p10)
}
  0x2b   : > { %s2272_s17 = smov 128   ;;  %s2273_s20 = smov 8  }
  0x2c   : > { %2097 = dma.hbm_to_vmem [thread:$0]  (!%p2385_p13), %s3314_s2, 2304, %s252_s18, [#allocation3], %s2272_s17, %s2272_s17, %s2273_s20  }
  0x2d   : > { %p3329_p0 = scmp.ne.s32.totalorder %s3326_s15, 0 }
  0x2e   : > { %p3330_p2 = scmp.ne.s32.totalorder (!%p3329_p0), %s3327_s16, 0 }
  0x2f   : > { %290 = sbr.rel (%p3329_p0) target bundleno = 769 (0x301), region = 48 }
  0x36   : > { %2240 = dma.done.wait (%p3330_p2), [#allocation3], 2304  }
  0x37   : > { %2242 = vsyncadd (%p3330_p2), [#allocation3], 4294964992  ;;  %p329_p4 = scmp.lt.s32.totalorder %s2261_s27, 1  ;;  %v2274_v0 = vmov 0.0|0.0   ;;  %v410_v12 = vld [vmem:[%s3315_s3 + $0x8] sm:$0xff]  ;;  %v409_v51 = vld [vmem:[%s3315_s3] sm:$0xff] }
  0x38   : > { %1906 = vmatprep.subr.bf16.mxu0 %v2274_v0  ;;  %1954 = vmatprep.subr.bf16.mxu1 %v2274_v0  ;;  %v601_v14 = vld [vmem:[%s3316_s4 + $0x8] sm:$0xff]  ;;  %v600_v52 = vld [vmem:[%s3316_s4] sm:$0xff]  ;;  %v412_v53 = vld [vmem:[%s3315_s3 + $0x18] sm:$0xff]  ;;  %vm1027_vm0 = vcmask 130048   ;;  %s326_s23 = sand.u32 1, %s2253_s25   ;;  %s1905_s18 = sshll.u32 %s2261_s27, 12 }
  0x39   : > { %s330_s19 = scalar_select %p329_p4, %s2261_s27, 1  ;;  %509 = vmatprep.mubr.f32.mxu0 %v410_v12  ;;  %700 = vmatprep.mubr.f32.mxu1 %v601_v14  ;;  %v603_v54 = vld [vmem:[%s3316_s4 + $0x18] sm:$0xff]  ;;  %v411_v55 = vld [vmem:[%s3315_s3 + $0x10] sm:$0xff]  ;;  %v414_v57 = vld [vmem:[%s3315_s3 + $0x28] sm:$0xff] }
  0x3a   : > { %v602_v56 = vld [vmem:[%s3316_s4 + $0x10] sm:$0xff]  ;;  %v605_v58 = vld [vmem:[%s3316_s4 + $0x28] sm:$0xff]  ;;  %v413_v59 = vld [vmem:[%s3315_s3 + $0x20] sm:$0xff]  ;;  %s3259_s8 = scalar_lea.hbm %s3319_s7, %s1905_s18  ;;  %s3266_s27 = scalar_lea.sflag [#allocation4], %s326_s23 }
  0x3b   : > { %s1904_s22 = sshll.u32 %s330_s19, 8  ;;  %v604_v60 = vld [vmem:[%s3316_s4 + $0x20] sm:$0xff]  ;;  %v416_v61 = vld [vmem:[%s3315_s3 + $0x38] sm:$0xff]  ;;  %v415_v63 = vld [vmem:[%s3315_s3 + $0x30] sm:$0xff]  ;;  %s1832_s19 = sshll.u32 %s326_s23, 8 }
  0x3c   : > { %s2418_s15 = scalar_lea.vmem %s3312_s0, %s1904_s22  ;;  %v607_v62 = vld [vmem:[%s3316_s4 + $0x38] sm:$0xff]  ;;  %v421_v12 = vld [vmem:[%s3315_s3 + $0x60] sm:$0xff]  ;;  %s3221_s22 = scalar_lea.vmem [#allocation5], %s1832_s19 }
  0x3d   : > { %v341_v1 = vld [vmem:[%s2418_s15] sm:$0xff]  ;;  %v342_v2 = vld [vmem:[%s2418_s15 + $0x8] sm:$0xff]  ;;  %v343_v3 = vld [vmem:[%s2418_s15 + $0x10] sm:$0xff]  ;;  %s1717_s30 = sshll.u32 %s3221_s22, 4  ;;  %p3331_p10 = scmp.ne.s32.totalorder %s3324_s11, 0  ;;  %s3261_s30 = int_to_ptr.vmem [resolvable:$true] %s1717_s30 }
  0x3e   : > { %v1907_v4 = vpack.c.bf16 %v342_v2, %v341_v1  ;;  %v344_v5 = vld [vmem:[%s2418_s15 + $0x18] sm:$0xff]  ;;  %v345_v7 = vld [vmem:[%s2418_s15 + $0x20] sm:$0xff]  ;;  %v346_v8 = vld [vmem:[%s2418_s15 + $0x28] sm:$0xff]  ;;  %s2187_s10 = scalar_lea.vmem %s3261_s30, 4096  ;;  %s2275_s12 = smov [#allocation5]  }
  0x3f   : > { %v1910_v6 = vpack.c.bf16 %v344_v5, %v343_v3  ;;  %v1913_v9 = vpack.c.bf16 %v346_v8, %v345_v7  ;;  %v347_v10 = vld [vmem:[%s2418_s15 + $0x30] sm:$0xff]  ;;  %v348_v11 = vld [vmem:[%s2418_s15 + $0x38] sm:$0xff]  ;;  %v349_v15 = vld [vmem:[%s2418_s15 + $0x40] sm:$0xff]  ;;  %p2188_p8 = scmp.ne.s32.totalorder %s3261_s30, %s2187_s10  ;;  %s2191_s17 = sshll.u32 %s2275_s12, 4  ;;  %s2192_s17 = int_to_ptr.vmem [resolvable:$false] %s2191_s17 }
  0x40   : > { %1908 = vmatpush1.bf16.msra.mxu0 %v1907_v4  ;;  %1956 = vmatpush1.bf16.msra.mxu1 %v1907_v4  ;;  %v1916_v13 = vpack.c.bf16 %v348_v11, %v347_v10  ;;  %v350_v16 = vld [vmem:[%s2418_s15 + $0x48] sm:$0xff]  ;;  %v351_v18 = vld [vmem:[%s2418_s15 + $0x50] sm:$0xff]  ;;  %v352_v19 = vld [vmem:[%s2418_s15 + $0x58] sm:$0xff]  ;;  %s2193_s20 = scalar_lea.vmem %s2192_s17, 8192  ;;  %p2194_p1 = scmp.lt.s32.totalorder %s3261_s30, %s2192_s17 }
  0x41   : > { %1909 = vmatprep.subr.bf16.mxu0 %v2274_v0  ;;  %1957 = vmatprep.subr.bf16.mxu1 %v2274_v0  ;;  %v1919_v17 = vpack.c.bf16 %v350_v16, %v349_v15  ;;  %v1922_v20 = vpack.c.bf16 %v352_v19, %v351_v18  ;;  %v353_v21 = vld [vmem:[%s2418_s15 + $0x60] sm:$0xff]  ;;  %v354_v22 = vld [vmem:[%s2418_s15 + $0x68] sm:$0xff]  ;;  %v355_v24 = vld [vmem:[%s2418_s15 + $0x70] sm:$0xff]  ;;  %p2189_p11 = pnand %p2188_p8, %p3331_p10  ;;  %p2195_p3 = scmp.lt.s32.totalorder %s2193_s20, %s2187_s10 }
  0x42   : > { %v1925_v23 = vpack.c.bf16 %v354_v22, %v353_v21  ;;  %v356_v25 = vld [vmem:[%s2418_s15 + $0x78] sm:$0xff]  ;;  %v357_v27 = vld [vmem:[%s2418_s15 + $0x80] sm:$0xff]  ;;  %v358_v28 = vld [vmem:[%s2418_s15 + $0x88] sm:$0xff] }
  0x43   : > { %v1928_v26 = vpack.c.bf16 %v356_v25, %v355_v24  ;;  %v1931_v29 = vpack.c.bf16 %v358_v28, %v357_v27  ;;  %v359_v30 = vld [vmem:[%s2418_s15 + $0x90] sm:$0xff]  ;;  %v360_v31 = vld [vmem:[%s2418_s15 + $0x98] sm:$0xff]  ;;  %v361_v33 = vld [vmem:[%s2418_s15 + $0xa0] sm:$0xff]  ;;  %p2190_p13 = pneg %p2189_p11  ;;  %p2196_p5 = por %p2195_p3, %p2194_p1 }
  0x44   : > { %1911 = vmatpush1.bf16.msra.mxu0 %v1910_v6  ;;  %1959 = vmatpush1.bf16.msra.mxu1 %v1910_v6  ;;  %v1934_v32 = vpack.c.bf16 %v360_v31, %v359_v30  ;;  %v362_v34 = vld [vmem:[%s2418_s15 + $0xa8] sm:$0xff]  ;;  %v363_v36 = vld [vmem:[%s2418_s15 + $0xb0] sm:$0xff]  ;;  %v364_v37 = vld [vmem:[%s2418_s15 + $0xb8] sm:$0xff] }
  0x45   : > { %1912 = vmatprep.subr.bf16.mxu0 %v2274_v0  ;;  %1960 = vmatprep.subr.bf16.mxu1 %v2274_v0  ;;  %v1937_v35 = vpack.c.bf16 %v362_v34, %v361_v33  ;;  %v1940_v38 = vpack.c.bf16 %v364_v37, %v363_v36  ;;  %v365_v39 = vld [vmem:[%s2418_s15 + $0xc0] sm:$0xff]  ;;  %v366_v40 = vld [vmem:[%s2418_s15 + $0xc8] sm:$0xff]  ;;  %v367_v42 = vld [vmem:[%s2418_s15 + $0xd0] sm:$0xff]  ;;  %p2197_p6 = pnand %p2196_p5, %p2190_p13 }
  0x46   : > { %v1943_v41 = vpack.c.bf16 %v366_v40, %v365_v39  ;;  %v368_v43 = vld [vmem:[%s2418_s15 + $0xd8] sm:$0xff]  ;;  %v369_v45 = vld [vmem:[%s2418_s15 + $0xe0] sm:$0xff]  ;;  %v370_v46 = vld [vmem:[%s2418_s15 + $0xe8] sm:$0xff] }
  0x47   : > { %v1946_v44 = vpack.c.bf16 %v368_v43, %v367_v42  ;;  %v1949_v47 = vpack.c.bf16 %v370_v46, %v369_v45  ;;  %v371_v48 = vld [vmem:[%s2418_s15 + $0xf0] sm:$0xff]  ;;  %v372_v49 = vld [vmem:[%s2418_s15 + $0xf8] sm:$0xff]  ;;  %v418_v2 = vld [vmem:[%s3315_s3 + $0x48] sm:$0xff] }
  0x48   : > { %1914 = vmatpush1.bf16.msra.mxu0 %v1913_v9  ;;  %1962 = vmatpush1.bf16.msra.mxu1 %v1913_v9  ;;  %v1952_v50 = vpack.c.bf16 %v372_v49, %v371_v48  ;;  %v606_v1 = vld [vmem:[%s3316_s4 + $0x30] sm:$0xff]  ;;  %v609_v3 = vld [vmem:[%s3316_s4 + $0x48] sm:$0xff]  ;;  %v417_v4 = vld [vmem:[%s3315_s3 + $0x40] sm:$0xff] }
  0x49   : > { %1915 = vmatprep.subr.bf16.mxu0 %v2274_v0  ;;  %1963 = vmatprep.subr.bf16.mxu1 %v2274_v0  ;;  %v608_v5 = vld [vmem:[%s3316_s4 + $0x40] sm:$0xff]  ;;  %v420_v6 = vld [vmem:[%s3315_s3 + $0x58] sm:$0xff]  ;;  %v419_v8 = vld [vmem:[%s3315_s3 + $0x50] sm:$0xff] }
  0x4a   : > { %v611_v7 = vld [vmem:[%s3316_s4 + $0x58] sm:$0xff]  ;;  %v610_v9 = vld [vmem:[%s3316_s4 + $0x50] sm:$0xff]  ;;  %v422_v10 = vld [vmem:[%s3315_s3 + $0x68] sm:$0xff] }
  0x4b   : > { %v613_v11 = vld [vmem:[%s3316_s4 + $0x68] sm:$0xff]  ;;  %v424_v14 = vld [vmem:[%s3315_s3 + $0x78] sm:$0xff]  ;;  %v423_v16 = vld [vmem:[%s3315_s3 + $0x70] sm:$0xff] }
  0x4c   : > { %1917 = vmatpush1.bf16.msra.mxu0 %v1916_v13  ;;  %1965 = vmatpush1.bf16.msra.mxu1 %v1916_v13  ;;  %v612_v13 = vld [vmem:[%s3316_s4 + $0x60] sm:$0xff]  ;;  %v615_v15 = vld [vmem:[%s3316_s4 + $0x78] sm:$0xff]  ;;  %v426_v18 = vld [vmem:[%s3315_s3 + $0x88] sm:$0xff] }
  0x4d   : > { %1918 = vmatprep.subr.bf16.mxu0 %v2274_v0  ;;  %1966 = vmatprep.subr.bf16.mxu1 %v2274_v0  ;;  %v617_v19 = vld [vmem:[%s3316_s4 + $0x88] sm:$0xff]  ;;  %v616_v21 = vld [vmem:[%s3316_s4 + $0x80] sm:$0xff]  ;;  %v428_v22 = vld [vmem:[%s3315_s3 + $0x98] sm:$0xff] }
  0x4e   : > { %v427_v24 = vld [vmem:[%s3315_s3 + $0x90] sm:$0xff]  ;;  %v621_v27 = vld [vmem:[%s3316_s4 + $0xa8] sm:$0xff]  ;;  %v429_v28 = vld [vmem:[%s3315_s3 + $0xa0] sm:$0xff] }
  0x4f   : > { %v618_v25 = vld [vmem:[%s3316_s4 + $0x90] sm:$0xff]  ;;  %v432_v30 = vld [vmem:[%s3315_s3 + $0xb8] sm:$0xff]  ;;  %v434_v34 = vld [vmem:[%s3315_s3 + $0xc8] sm:$0xff] }
  0x50   : > { %1920 = vmatpush1.bf16.msra.mxu0 %v1919_v17  ;;  %1968 = vmatpush1.bf16.msra.mxu1 %v1919_v17  ;;  %v614_v17 = vld [vmem:[%s3316_s4 + $0x70] sm:$0xff]  ;;  %v623_v31 = vld [vmem:[%s3316_s4 + $0xb8] sm:$0xff]  ;;  %v433_v36 = vld [vmem:[%s3315_s3 + $0xc0] sm:$0xff] }
  0x51   : > { %1921 = vmatprep.subr.bf16.mxu0 %v2274_v0  ;;  %1969 = vmatprep.subr.bf16.mxu1 %v2274_v0  ;;  %v622_v33 = vld [vmem:[%s3316_s4 + $0xb0] sm:$0xff]  ;;  %v624_v37 = vld [vmem:[%s3316_s4 + $0xc0] sm:$0xff]  ;;  %v627_v39 = vld [vmem:[%s3316_s4 + $0xd8] sm:$0xff] }
  0x52   : > { %v435_v40 = vld [vmem:[%s3315_s3 + $0xd0] sm:$0xff]  ;;  %v438_v42 = vld [vmem:[%s3315_s3 + $0xe8] sm:$0xff]  ;;  %v628_v45 = vld [vmem:[%s3316_s4 + $0xe0] sm:$0xff] }
  0x53   : > { %v629_v43 = vld [vmem:[%s3316_s4 + $0xe8] sm:$0xff]  ;;  %v440_v46 = vld [vmem:[%s3315_s3 + $0xf8] sm:$0xff]  ;;  %v439_v48 = vld [vmem:[%s3315_s3 + $0xf0] sm:$0xff] }
  0x54   : > { %1923 = vmatpush1.bf16.msra.mxu0 %v1922_v20  ;;  %1971 = vmatpush1.bf16.msra.mxu1 %v1922_v20  ;;  %v425_v20 = vld [vmem:[%s3315_s3 + $0x80] sm:$0xff]  ;;  %v630_v49 = vld [vmem:[%s3316_s4 + $0xf0] sm:$0xff] }
  0x55   : > { %1924 = vmatprep.subr.bf16.mxu0 %v2274_v0  ;;  %1972 = vmatprep.subr.bf16.mxu1 %v2274_v0 }
  0x58   : > { %1926 = vmatpush1.bf16.msra.mxu0 %v1925_v23  ;;  %1974 = vmatpush1.bf16.msra.mxu1 %v1925_v23  ;;  %v619_v23 = vld [vmem:[%s3316_s4 + $0x98] sm:$0xff] }
  0x59   : > { %1927 = vmatprep.subr.bf16.mxu0 %v2274_v0  ;;  %1975 = vmatprep.subr.bf16.mxu1 %v2274_v0 }
  0x5c   : > { %1929 = vmatpush1.bf16.msra.mxu0 %v1928_v26  ;;  %1977 = vmatpush1.bf16.msra.mxu1 %v1928_v26  ;;  %v430_v26 = vld [vmem:[%s3315_s3 + $0xa8] sm:$0xff] }
  0x5d   : > { %1930 = vmatprep.subr.bf16.mxu0 %v2274_v0  ;;  %1978 = vmatprep.subr.bf16.mxu1 %v2274_v0 }
  0x60   : > { %1932 = vmatpush1.bf16.msra.mxu0 %v1931_v29  ;;  %1980 = vmatpush1.bf16.msra.mxu1 %v1931_v29  ;;  %v620_v29 = vld [vmem:[%s3316_s4 + $0xa0] sm:$0xff] }
  0x61   : > { %1933 = vmatprep.subr.bf16.mxu0 %v2274_v0  ;;  %1981 = vmatprep.subr.bf16.mxu1 %v2274_v0 }
  0x64   : > { %1935 = vmatpush1.bf16.msra.mxu0 %v1934_v32  ;;  %1983 = vmatpush1.bf16.msra.mxu1 %v1934_v32  ;;  %v431_v32 = vld [vmem:[%s3315_s3 + $0xb0] sm:$0xff] }
  0x65   : > { %1936 = vmatprep.subr.bf16.mxu0 %v2274_v0  ;;  %1984 = vmatprep.subr.bf16.mxu1 %v2274_v0 }
  0x68   : > { %1938 = vmatpush1.bf16.msra.mxu0 %v1937_v35  ;;  %1986 = vmatpush1.bf16.msra.mxu1 %v1937_v35  ;;  %v625_v35 = vld [vmem:[%s3316_s4 + $0xc8] sm:$0xff] }
  0x69   : > { %1939 = vmatprep.subr.bf16.mxu0 %v2274_v0  ;;  %1987 = vmatprep.subr.bf16.mxu1 %v2274_v0 }
  0x6c   : > { %1941 = vmatpush1.bf16.msra.mxu0 %v1940_v38  ;;  %1989 = vmatpush1.bf16.msra.mxu1 %v1940_v38  ;;  %v436_v38 = vld [vmem:[%s3315_s3 + $0xd8] sm:$0xff] }
  0x6d   : > { %1942 = vmatprep.subr.bf16.mxu0 %v2274_v0  ;;  %1990 = vmatprep.subr.bf16.mxu1 %v2274_v0 }
  0x70   : > { %1944 = vmatpush1.bf16.msra.mxu0 %v1943_v41  ;;  %1992 = vmatpush1.bf16.msra.mxu1 %v1943_v41  ;;  %v626_v41 = vld [vmem:[%s3316_s4 + $0xd0] sm:$0xff] }
  0x71   : > { %1945 = vmatprep.subr.bf16.mxu0 %v2274_v0  ;;  %1993 = vmatprep.subr.bf16.mxu1 %v2274_v0 }
  0x74   : > { %1947 = vmatpush1.bf16.msra.mxu0 %v1946_v44  ;;  %1995 = vmatpush1.bf16.msra.mxu1 %v1946_v44  ;;  %v437_v44 = vld [vmem:[%s3315_s3 + $0xe0] sm:$0xff] }
  0x75   : > { %1948 = vmatprep.subr.bf16.mxu0 %v2274_v0  ;;  %1996 = vmatprep.subr.bf16.mxu1 %v2274_v0 }
  0x78   : > { %1950 = vmatpush1.bf16.msra.mxu0 %v1949_v47  ;;  %1998 = vmatpush1.bf16.msra.mxu1 %v1949_v47  ;;  %v631_v47 = vld [vmem:[%s3316_s4 + $0xf8] sm:$0xff] }
  0x79   : > { %1951 = vmatprep.subr.bf16.mxu0 %v2274_v0  ;;  %1999 = vmatprep.subr.bf16.mxu1 %v2274_v0 }
  0x7c   : > { %1953 = vmatpush1.bf16.msra.mxu0 %v1952_v50  ;;  %2001 = vmatpush1.bf16.msra.mxu1 %v1952_v50  ;;  %v442_v50 = vld [vmem:[%s3315_s3 + $0x108] sm:$0xff] }
  0x7d   : > { %2002 = vmatprep.subr.bf16.mxu1 %v2274_v0  ;;  %2029 = vmatprep.subr.bf16.mxu0 %v2274_v0 }
  0x7f   : > { %510 = vmatmul.mubr.f32.vlgmr.msra.gmra.mrb[0].mxu0 %v409_v51  ;;  %701 = vmatmul.mubr.f32.vlgmr.msra.gmra.mrb[0].mxu1 %v600_v52  ;;  %v633_v51 = vld [vmem:[%s3316_s4 + $0x108] sm:$0xff]  ;;  %v441_v52 = vld [vmem:[%s3315_s3 + $0x100] sm:$0xff] }
  0x80   : > { %514 = vmatprep.mubr.f32.mxu0 %v412_v53  ;;  %705 = vmatprep.mubr.f32.mxu1 %v603_v54  ;;  %v632_v53 = vld [vmem:[%s3316_s4 + $0x100] sm:$0xff]  ;;  %v444_v54 = vld [vmem:[%s3315_s3 + $0x118] sm:$0xff] }
  0x83   : > { %515 = vmatmul.mubr.f32.gmra.mrb[2].mxu0 %v411_v55  ;;  %706 = vmatmul.mubr.f32.gmra.mrb[2].mxu1 %v602_v56  ;;  %v635_v55 = vld [vmem:[%s3316_s4 + $0x118] sm:$0xff]  ;;  %v443_v56 = vld [vmem:[%s3315_s3 + $0x110] sm:$0xff] }
  0x84   : > { %519 = vmatprep.mubr.f32.mxu0 %v414_v57  ;;  %710 = vmatprep.mubr.f32.mxu1 %v605_v58  ;;  %v634_v57 = vld [vmem:[%s3316_s4 + $0x110] sm:$0xff]  ;;  %v964_v58 = vld [vmem:[%s3318_s6 + $0x8] sm:$0xff] }
  0x87   : > { %520 = vmatmul.mubr.f32.gmra.mrb[4].mxu0 %v413_v59  ;;  %711 = vmatmul.mubr.f32.gmra.mrb[4].mxu1 %v604_v60  ;;  %v900_v59 = vld [vmem:[%s3317_s5 + $0x8] sm:$0xff]  ;;  %v373_v60 = vld [vmem:[%s3313_s1] sm:$0xff] }
  0x88   : > { %524 = vmatprep.mubr.f32.mxu0 %v416_v61  ;;  %715 = vmatprep.mubr.f32.mxu1 %v607_v62  ;;  %v391_v61 = vld [vmem:[#allocation2] sm:$0xff] }
  0x8b   : > { %525 = vmatmul.mubr.f32.gmra.mrb[6].mxu0 %v415_v63  ;;  %716 = vmatmul.mubr.f32.gmra.mrb[6].mxu1 %v606_v1 }
  0x8c   : > { %529 = vmatprep.mubr.f32.mxu0 %v418_v2  ;;  %720 = vmatprep.mubr.f32.mxu1 %v609_v3 }
  0x8f   : > { %530 = vmatmul.mubr.f32.gmra.mrb[8].mxu0 %v417_v4  ;;  %721 = vmatmul.mubr.f32.gmra.mrb[8].mxu1 %v608_v5 }
  0x90   : > { %534 = vmatprep.mubr.f32.mxu0 %v420_v6  ;;  %725 = vmatprep.mubr.f32.mxu1 %v611_v7  ;;  %v374_v7 = vld [vmem:[%s3313_s1 + $0x8] sm:$0xff] }
  0x93   : > { %535 = vmatmul.mubr.f32.gmra.mrb[10].mxu0 %v419_v8  ;;  %726 = vmatmul.mubr.f32.gmra.mrb[10].mxu1 %v610_v9  ;;  %v392_v8 = vld [vmem:[#allocation2 + $0x8] sm:$0xff] }
  0x94   : > { %539 = vmatprep.mubr.f32.mxu0 %v422_v10  ;;  %730 = vmatprep.mubr.f32.mxu1 %v613_v11 }
  0x97   : > { %540 = vmatmul.mubr.f32.gmra.mrb[12].mxu0 %v421_v12  ;;  %731 = vmatmul.mubr.f32.gmra.mrb[12].mxu1 %v612_v13 }
  0x98   : > { %544 = vmatprep.mubr.f32.mxu0 %v424_v14  ;;  %735 = vmatprep.mubr.f32.mxu1 %v615_v15 }
  0x9b   : > { %545 = vmatmul.mubr.f32.gmra.mrb[14].mxu0 %v423_v16  ;;  %736 = vmatmul.mubr.f32.gmra.mrb[14].mxu1 %v614_v17 }
  0x9c   : > { %549 = vmatprep.mubr.f32.mxu0 %v426_v18  ;;  %740 = vmatprep.mubr.f32.mxu1 %v617_v19  ;;  %v375_v19 = vld [vmem:[%s3313_s1 + $0x10] sm:$0xff] }
  0x9f   : > { %550 = vmatmul.mubr.f32.gmra.mrb[16].mxu0 %v425_v20  ;;  %741 = vmatmul.mubr.f32.gmra.mrb[16].mxu1 %v616_v21  ;;  %v393_v20 = vld [vmem:[#allocation2 + $0x10] sm:$0xff] }
  0xa0   : > { %554 = vmatprep.mubr.f32.mxu0 %v428_v22  ;;  %745 = vmatprep.mubr.f32.mxu1 %v619_v23 }
  0xa3   : > { %555 = vmatmul.mubr.f32.gmra.mrb[18].mxu0 %v427_v24  ;;  %746 = vmatmul.mubr.f32.gmra.mrb[18].mxu1 %v618_v25 }
  0xa4   : > { %559 = vmatprep.mubr.f32.mxu0 %v430_v26  ;;  %750 = vmatprep.mubr.f32.mxu1 %v621_v27 }
  0xa7   : > { %560 = vmatmul.mubr.f32.gmra.mrb[20].mxu0 %v429_v28  ;;  %751 = vmatmul.mubr.f32.gmra.mrb[20].mxu1 %v620_v29 }
  0xa8   : > { %564 = vmatprep.mubr.f32.mxu0 %v432_v30  ;;  %755 = vmatprep.mubr.f32.mxu1 %v623_v31 }
  0xab   : > { %565 = vmatmul.mubr.f32.gmra.mrb[22].mxu0 %v431_v32  ;;  %756 = vmatmul.mubr.f32.gmra.mrb[22].mxu1 %v622_v33  ;;  %v376_v33 = vld [vmem:[%s3313_s1 + $0x18] sm:$0xff] }
  0xac   : > { %569 = vmatprep.mubr.f32.mxu0 %v434_v34  ;;  %760 = vmatprep.mubr.f32.mxu1 %v625_v35  ;;  %v394_v34 = vld [vmem:[#allocation2 + $0x18] sm:$0xff] }
  0xaf   : > { %570 = vmatmul.mubr.f32.gmra.mrb[24].mxu0 %v433_v36  ;;  %761 = vmatmul.mubr.f32.gmra.mrb[24].mxu1 %v624_v37 }
  0xb0   : > { %574 = vmatprep.mubr.f32.mxu0 %v436_v38  ;;  %765 = vmatprep.mubr.f32.mxu1 %v627_v39 }
  0xb3   : > { %575 = vmatmul.mubr.f32.gmra.mrb[26].mxu0 %v435_v40  ;;  %766 = vmatmul.mubr.f32.gmra.mrb[26].mxu1 %v626_v41 }
  0xb4   : > { %579 = vmatprep.mubr.f32.mxu0 %v438_v42  ;;  %770 = vmatprep.mubr.f32.mxu1 %v629_v43 }
  0xb7   : > { %580 = vmatmul.mubr.f32.gmra.mrb[28].mxu0 %v437_v44  ;;  %771 = vmatmul.mubr.f32.gmra.mrb[28].mxu1 %v628_v45  ;;  %v377_v45 = vld [vmem:[%s3313_s1 + $0x20] sm:$0xff] }
  0xb8   : > { %584 = vmatprep.mubr.f32.mxu0 %v440_v46  ;;  %775 = vmatprep.mubr.f32.mxu1 %v631_v47  ;;  %v395_v46 = vld [vmem:[#allocation2 + $0x20] sm:$0xff] }
  0xbb   : > { %585 = vmatmul.mubr.f32.gmra.mrb[30].mxu0 %v439_v48  ;;  %776 = vmatmul.mubr.f32.gmra.mrb[30].mxu1 %v630_v49 }
  0xbc   : > { %589 = vmatprep.mubr.f32.mxu0 %v442_v50  ;;  %780 = vmatprep.mubr.f32.mxu1 %v633_v51 }
  0xbf   : > { %590 = vmatmul.mubr.f32.gmra.mrb[32].mxu0 %v441_v52  ;;  %781 = vmatmul.mubr.f32.gmra.mrb[32].mxu1 %v632_v53 }
  0xc0   : > { %594 = vmatprep.mubr.f32.mxu0 %v444_v54  ;;  %785 = vmatprep.mubr.f32.mxu1 %v635_v55 }
  0xc3   : > { %595 = vmatmul.mubr.f32.gmra.mrb[34].mxu0 %v443_v56  ;;  %786 = vmatmul.mubr.f32.gmra.mrb[34].mxu1 %v634_v57 }
  0xc4   : > { %1835 = vmatprep.mubr.msk.f32.mxu1 %vm1027_vm0, %v964_v58  ;;  %1867 = vmatprep.mubr.msk.f32.mxu0 %vm1027_vm0, %v900_v59  ;;  %v378_v59 = vld [vmem:[%s3313_s1 + $0x28] sm:$0xff] }
 0x152   : > { %v511_v62 = vpop.f32.mrb[0].mxu0  ;;  %v702_v63 = vpop.f32.mrb[0].mxu1 }
 0x153   : > { %v791_v1 = vmul.f32 %v511_v62, %v373_v60  ;;  %v845_v2 = vmul.f32 %v511_v62, %v391_v61  ;;  %v809_v3 = vmul.f32 %v702_v63, %v391_v61  ;;  %v863_v4 = vmul.f32 %v702_v63, %v373_v60  ;;  %v513_v5 = vpop.f32.mrb[1].mxu0  ;;  %v704_v6 = vpop.f32.mrb[1].mxu1  ;;  %v396_v60 = vld [vmem:[#allocation2 + $0x28] sm:$0xff] }
 0x155   : > { %v827_v9 = vsub.f32 %v791_v1, %v809_v3  ;;  %v881_v10 = vadd.f32 %v863_v4, %v845_v2 }
 0x156   : > { %v516_v11 = vpop.f32.mrb[2].mxu0  ;;  %v707_v12 = vpop.f32.mrb[2].mxu1 }
 0x157   : > { %v792_v13 = vmul.f32 %v516_v11, %v374_v7  ;;  %v846_v14 = vmul.f32 %v516_v11, %v392_v8  ;;  %v810_v15 = vmul.f32 %v707_v12, %v392_v8  ;;  %v864_v16 = vmul.f32 %v707_v12, %v374_v7  ;;  %v518_v17 = vpop.f32.mrb[3].mxu0  ;;  %v709_v18 = vpop.f32.mrb[3].mxu1  ;;  %v379_v8 = vld [vmem:[%s3313_s1 + $0x30] sm:$0xff] }
 0x159   : > { %v828_v21 = vsub.f32 %v792_v13, %v810_v15  ;;  %v882_v22 = vadd.f32 %v864_v16, %v846_v14 }
 0x15a   : > { %v521_v23 = vpop.f32.mrb[4].mxu0  ;;  %v712_v24 = vpop.f32.mrb[4].mxu1 }
 0x15b   : > { %v2003_v25 = vpack.c.bf16 %v882_v22, %v881_v10  ;;  %v2030_v26 = vpack.c.bf16 %v828_v21, %v827_v9  ;;  %v793_v27 = vmul.f32 %v521_v23, %v375_v19  ;;  %v847_v28 = vmul.f32 %v521_v23, %v393_v20  ;;  %v523_v29 = vpop.f32.mrb[5].mxu0  ;;  %v714_v30 = vpop.f32.mrb[5].mxu1  ;;  %v397_v9 = vld [vmem:[#allocation2 + $0x30] sm:$0xff]  ;;  %v380_v22 = vld [vmem:[%s3313_s1 + $0x38] sm:$0xff] }
 0x15c   : > { %v811_v31 = vmul.f32 %v712_v24, %v393_v20  ;;  %v865_v32 = vmul.f32 %v712_v24, %v375_v19  ;;  %v398_v23 = vld [vmem:[#allocation2 + $0x38] sm:$0xff] }
 0x15d   : > { %2004 = vmatpush1.bf16.msra.mxu1 %v2003_v25  ;;  %2031 = vmatpush1.bf16.msra.mxu0 %v2030_v26 }
 0x15e   : > { %v829_v35 = vsub.f32 %v793_v27, %v811_v31  ;;  %v883_v36 = vadd.f32 %v865_v32, %v847_v28  ;;  %v526_v37 = vpop.f32.mrb[6].mxu0  ;;  %v717_v38 = vpop.f32.mrb[6].mxu1  ;;  %2005 = vmatprep.subr.bf16.mxu1 %v2274_v0  ;;  %2032 = vmatprep.subr.bf16.mxu0 %v2274_v0 }
 0x15f   : > { %v794_v39 = vmul.f32 %v526_v37, %v376_v33  ;;  %v848_v40 = vmul.f32 %v526_v37, %v394_v34  ;;  %v812_v41 = vmul.f32 %v717_v38, %v394_v34  ;;  %v866_v42 = vmul.f32 %v717_v38, %v376_v33  ;;  %v528_v43 = vpop.f32.mrb[7].mxu0  ;;  %v719_v44 = vpop.f32.mrb[7].mxu1  ;;  %v381_v34 = vld [vmem:[%s3313_s1 + $0x40] sm:$0xff] }
 0x161   : > { %v830_v47 = vsub.f32 %v794_v39, %v812_v41  ;;  %v884_v48 = vadd.f32 %v866_v42, %v848_v40 }
 0x162   : > { %v531_v49 = vpop.f32.mrb[8].mxu0  ;;  %v722_v50 = vpop.f32.mrb[8].mxu1 }
 0x163   : > { %v2006_v51 = vpack.c.bf16 %v884_v48, %v883_v36  ;;  %v2033_v52 = vpack.c.bf16 %v830_v47, %v829_v35  ;;  %v795_v53 = vmul.f32 %v531_v49, %v377_v45  ;;  %v849_v54 = vmul.f32 %v531_v49, %v395_v46  ;;  %v533_v55 = vpop.f32.mrb[9].mxu0  ;;  %v724_v56 = vpop.f32.mrb[9].mxu1  ;;  %v399_v35 = vld [vmem:[#allocation2 + $0x40] sm:$0xff]  ;;  %v382_v48 = vld [vmem:[%s3313_s1 + $0x48] sm:$0xff] }
 0x164   : > { %v813_v57 = vmul.f32 %v722_v50, %v395_v46  ;;  %v867_v58 = vmul.f32 %v722_v50, %v377_v45  ;;  %v400_v49 = vld [vmem:[#allocation2 + $0x48] sm:$0xff] }
 0x165   : > { %2007 = vmatpush1.bf16.msra.mxu1 %v2006_v51  ;;  %2034 = vmatpush1.bf16.msra.mxu0 %v2033_v52 }
 0x166   : > { %v831_v61 = vsub.f32 %v795_v53, %v813_v57  ;;  %v885_v62 = vadd.f32 %v867_v58, %v849_v54  ;;  %v536_v63 = vpop.f32.mrb[10].mxu0  ;;  %v727_v1 = vpop.f32.mrb[10].mxu1  ;;  %2008 = vmatprep.subr.bf16.mxu1 %v2274_v0  ;;  %2035 = vmatprep.subr.bf16.mxu0 %v2274_v0 }
 0x167   : > { %v796_v2 = vmul.f32 %v536_v63, %v378_v59  ;;  %v850_v3 = vmul.f32 %v536_v63, %v396_v60  ;;  %v814_v4 = vmul.f32 %v727_v1, %v396_v60  ;;  %v868_v5 = vmul.f32 %v727_v1, %v378_v59  ;;  %v538_v6 = vpop.f32.mrb[11].mxu0  ;;  %v729_v7 = vpop.f32.mrb[11].mxu1  ;;  %v383_v60 = vld [vmem:[%s3313_s1 + $0x50] sm:$0xff] }
 0x169   : > { %v832_v10 = vsub.f32 %v796_v2, %v814_v4  ;;  %v886_v11 = vadd.f32 %v868_v5, %v850_v3 }
 0x16a   : > { %v541_v12 = vpop.f32.mrb[12].mxu0  ;;  %v732_v13 = vpop.f32.mrb[12].mxu1 }
 0x16b   : > { %v2009_v14 = vpack.c.bf16 %v886_v11, %v885_v62  ;;  %v2036_v15 = vpack.c.bf16 %v832_v10, %v831_v61  ;;  %v797_v16 = vmul.f32 %v541_v12, %v379_v8  ;;  %v851_v17 = vmul.f32 %v541_v12, %v397_v9  ;;  %v543_v18 = vpop.f32.mrb[13].mxu0  ;;  %v734_v19 = vpop.f32.mrb[13].mxu1  ;;  %v401_v61 = vld [vmem:[#allocation2 + $0x50] sm:$0xff]  ;;  %v384_v11 = vld [vmem:[%s3313_s1 + $0x58] sm:$0xff] }
 0x16c   : > { %v815_v20 = vmul.f32 %v732_v13, %v397_v9  ;;  %v869_v21 = vmul.f32 %v732_v13, %v379_v8  ;;  %v402_v12 = vld [vmem:[#allocation2 + $0x58] sm:$0xff] }
 0x16d   : > { %2010 = vmatpush1.bf16.msra.mxu1 %v2009_v14  ;;  %2037 = vmatpush1.bf16.msra.mxu0 %v2036_v15 }
 0x16e   : > { %v833_v24 = vsub.f32 %v797_v16, %v815_v20  ;;  %v887_v25 = vadd.f32 %v869_v21, %v851_v17  ;;  %v546_v26 = vpop.f32.mrb[14].mxu0  ;;  %v737_v27 = vpop.f32.mrb[14].mxu1  ;;  %2011 = vmatprep.subr.bf16.mxu1 %v2274_v0  ;;  %2038 = vmatprep.subr.bf16.mxu0 %v2274_v0 }
 0x16f   : > { %v798_v28 = vmul.f32 %v546_v26, %v380_v22  ;;  %v852_v29 = vmul.f32 %v546_v26, %v398_v23  ;;  %v816_v30 = vmul.f32 %v737_v27, %v398_v23  ;;  %v870_v31 = vmul.f32 %v737_v27, %v380_v22  ;;  %v548_v32 = vpop.f32.mrb[15].mxu0  ;;  %v739_v33 = vpop.f32.mrb[15].mxu1  ;;  %v385_v23 = vld [vmem:[%s3313_s1 + $0x60] sm:$0xff] }
 0x171   : > { %v834_v36 = vsub.f32 %v798_v28, %v816_v30  ;;  %v888_v37 = vadd.f32 %v870_v31, %v852_v29 }
 0x172   : > { %v551_v38 = vpop.f32.mrb[16].mxu0  ;;  %v742_v39 = vpop.f32.mrb[16].mxu1 }
 0x173   : > { %v2012_v40 = vpack.c.bf16 %v888_v37, %v887_v25  ;;  %v2039_v41 = vpack.c.bf16 %v834_v36, %v833_v24  ;;  %v799_v42 = vmul.f32 %v551_v38, %v381_v34  ;;  %v853_v43 = vmul.f32 %v551_v38, %v399_v35  ;;  %v553_v44 = vpop.f32.mrb[17].mxu0  ;;  %v744_v45 = vpop.f32.mrb[17].mxu1  ;;  %v403_v24 = vld [vmem:[#allocation2 + $0x60] sm:$0xff]  ;;  %v386_v37 = vld [vmem:[%s3313_s1 + $0x68] sm:$0xff] }
 0x174   : > { %v817_v46 = vmul.f32 %v742_v39, %v399_v35  ;;  %v871_v47 = vmul.f32 %v742_v39, %v381_v34  ;;  %v404_v38 = vld [vmem:[#allocation2 + $0x68] sm:$0xff] }
 0x175   : > { %2013 = vmatpush1.bf16.msra.mxu1 %v2012_v40  ;;  %2040 = vmatpush1.bf16.msra.mxu0 %v2039_v41 }
 0x176   : > { %v835_v50 = vsub.f32 %v799_v42, %v817_v46  ;;  %v889_v51 = vadd.f32 %v871_v47, %v853_v43  ;;  %v556_v52 = vpop.f32.mrb[18].mxu0  ;;  %v747_v53 = vpop.f32.mrb[18].mxu1  ;;  %2014 = vmatprep.subr.bf16.mxu1 %v2274_v0  ;;  %2041 = vmatprep.subr.bf16.mxu0 %v2274_v0 }
 0x177   : > { %v800_v54 = vmul.f32 %v556_v52, %v382_v48  ;;  %v854_v55 = vmul.f32 %v556_v52, %v400_v49  ;;  %v818_v56 = vmul.f32 %v747_v53, %v400_v49  ;;  %v872_v57 = vmul.f32 %v747_v53, %v382_v48  ;;  %v558_v58 = vpop.f32.mrb[19].mxu0  ;;  %v749_v59 = vpop.f32.mrb[19].mxu1  ;;  %v387_v49 = vld [vmem:[%s3313_s1 + $0x70] sm:$0xff] }
 0x179   : > { %v836_v62 = vsub.f32 %v800_v54, %v818_v56  ;;  %v890_v63 = vadd.f32 %v872_v57, %v854_v55 }
 0x17a   : > { %v561_v1 = vpop.f32.mrb[20].mxu0  ;;  %v752_v2 = vpop.f32.mrb[20].mxu1 }
 0x17b   : > { %v2015_v3 = vpack.c.bf16 %v890_v63, %v889_v51  ;;  %v2042_v4 = vpack.c.bf16 %v836_v62, %v835_v50  ;;  %v801_v5 = vmul.f32 %v561_v1, %v383_v60  ;;  %v855_v6 = vmul.f32 %v561_v1, %v401_v61  ;;  %v563_v7 = vpop.f32.mrb[21].mxu0  ;;  %v754_v8 = vpop.f32.mrb[21].mxu1  ;;  %v405_v50 = vld [vmem:[#allocation2 + $0x70] sm:$0xff]  ;;  %v388_v63 = vld [vmem:[%s3313_s1 + $0x78] sm:$0xff] }
 0x17c   : > { %v819_v9 = vmul.f32 %v752_v2, %v401_v61  ;;  %v873_v10 = vmul.f32 %v752_v2, %v383_v60  ;;  %v406_v1 = vld [vmem:[#allocation2 + $0x78] sm:$0xff] }
 0x17d   : > { %2016 = vmatpush1.bf16.msra.mxu1 %v2015_v3  ;;  %2043 = vmatpush1.bf16.msra.mxu0 %v2042_v4 }
 0x17e   : > { %v837_v13 = vsub.f32 %v801_v5, %v819_v9  ;;  %v891_v14 = vadd.f32 %v873_v10, %v855_v6  ;;  %v566_v15 = vpop.f32.mrb[22].mxu0  ;;  %v757_v16 = vpop.f32.mrb[22].mxu1  ;;  %2017 = vmatprep.subr.bf16.mxu1 %v2274_v0  ;;  %2044 = vmatprep.subr.bf16.mxu0 %v2274_v0 }
 0x17f   : > { %v802_v17 = vmul.f32 %v566_v15, %v384_v11  ;;  %v856_v18 = vmul.f32 %v566_v15, %v402_v12  ;;  %v820_v19 = vmul.f32 %v757_v16, %v402_v12  ;;  %v874_v20 = vmul.f32 %v757_v16, %v384_v11  ;;  %v568_v21 = vpop.f32.mrb[23].mxu0  ;;  %v759_v22 = vpop.f32.mrb[23].mxu1  ;;  %v389_v12 = vld [vmem:[%s3313_s1 + $0x80] sm:$0xff] }
 0x181   : > { %v838_v25 = vsub.f32 %v802_v17, %v820_v19  ;;  %v892_v26 = vadd.f32 %v874_v20, %v856_v18 }
 0x182   : > { %v571_v27 = vpop.f32.mrb[24].mxu0  ;;  %v762_v28 = vpop.f32.mrb[24].mxu1 }
 0x183   : > { %v2018_v29 = vpack.c.bf16 %v892_v26, %v891_v14  ;;  %v2045_v30 = vpack.c.bf16 %v838_v25, %v837_v13  ;;  %v803_v31 = vmul.f32 %v571_v27, %v385_v23  ;;  %v857_v32 = vmul.f32 %v571_v27, %v403_v24  ;;  %v573_v33 = vpop.f32.mrb[25].mxu0  ;;  %v764_v34 = vpop.f32.mrb[25].mxu1  ;;  %v407_v13 = vld [vmem:[#allocation2 + $0x80] sm:$0xff]  ;;  %v390_v26 = vld [vmem:[%s3313_s1 + $0x88] sm:$0xff] }
 0x184   : > { %v821_v35 = vmul.f32 %v762_v28, %v403_v24  ;;  %v875_v36 = vmul.f32 %v762_v28, %v385_v23  ;;  %v408_v27 = vld [vmem:[#allocation2 + $0x88] sm:$0xff] }
 0x185   : > { %2019 = vmatpush1.bf16.msra.mxu1 %v2018_v29  ;;  %2046 = vmatpush1.bf16.msra.mxu0 %v2045_v30 }
 0x186   : > { %v839_v39 = vsub.f32 %v803_v31, %v821_v35  ;;  %v893_v40 = vadd.f32 %v875_v36, %v857_v32  ;;  %v576_v41 = vpop.f32.mrb[26].mxu0  ;;  %v767_v42 = vpop.f32.mrb[26].mxu1  ;;  %2020 = vmatprep.subr.bf16.mxu1 %v2274_v0  ;;  %2047 = vmatprep.subr.bf16.mxu0 %v2274_v0 }
 0x187   : > { %v804_v43 = vmul.f32 %v576_v41, %v386_v37  ;;  %v858_v44 = vmul.f32 %v576_v41, %v404_v38  ;;  %v822_v45 = vmul.f32 %v767_v42, %v404_v38  ;;  %v876_v46 = vmul.f32 %v767_v42, %v386_v37  ;;  %v578_v47 = vpop.f32.mrb[27].mxu0  ;;  %v769_v48 = vpop.f32.mrb[27].mxu1  ;;  %v963_v42 = vld [vmem:[%s3318_s6] sm:$0xff] }
 0x188   : > { %v968_v47 = vld [vmem:[%s3318_s6 + $0x28] sm:$0xff] }
 0x189   : > { %v840_v51 = vsub.f32 %v804_v43, %v822_v45  ;;  %v894_v52 = vadd.f32 %v876_v46, %v858_v44  ;;  %v966_v43 = vld [vmem:[%s3318_s6 + $0x18] sm:$0xff]  ;;  %v965_v45 = vld [vmem:[%s3318_s6 + $0x10] sm:$0xff]  ;;  %v904_v48 = vld [vmem:[%s3317_s5 + $0x28] sm:$0xff] }
 0x18a   : > { %v581_v53 = vpop.f32.mrb[28].mxu0  ;;  %v772_v54 = vpop.f32.mrb[28].mxu1  ;;  %v902_v44 = vld [vmem:[%s3317_s5 + $0x18] sm:$0xff]  ;;  %v901_v46 = vld [vmem:[%s3317_s5 + $0x10] sm:$0xff] }
 0x18b   : > { %v2021_v55 = vpack.c.bf16 %v894_v52, %v893_v40  ;;  %v2048_v56 = vpack.c.bf16 %v840_v51, %v839_v39  ;;  %v805_v57 = vmul.f32 %v581_v53, %v387_v49  ;;  %v859_v58 = vmul.f32 %v581_v53, %v405_v50  ;;  %v583_v59 = vpop.f32.mrb[29].mxu0  ;;  %v774_v60 = vpop.f32.mrb[29].mxu1  ;;  %v970_v51 = vld [vmem:[%s3318_s6 + $0x38] sm:$0xff]  ;;  %v969_v53 = vld [vmem:[%s3318_s6 + $0x30] sm:$0xff] }
 0x18c   : > { %v823_v61 = vmul.f32 %v772_v54, %v405_v50  ;;  %v877_v62 = vmul.f32 %v772_v54, %v387_v49  ;;  %v967_v49 = vld [vmem:[%s3318_s6 + $0x20] sm:$0xff]  ;;  %v906_v52 = vld [vmem:[%s3317_s5 + $0x38] sm:$0xff]  ;;  %v905_v54 = vld [vmem:[%s3317_s5 + $0x30] sm:$0xff] }
 0x18d   : > { %2022 = vmatpush1.bf16.msra.mxu1 %v2021_v55  ;;  %2049 = vmatpush1.bf16.msra.mxu0 %v2048_v56  ;;  %v903_v50 = vld [vmem:[%s3317_s5 + $0x20] sm:$0xff]  ;;  %v972_v55 = vld [vmem:[%s3318_s6 + $0x48] sm:$0xff]  ;;  %v974_v59 = vld [vmem:[%s3318_s6 + $0x58] sm:$0xff] }
 0x18e   : > { %v841_v2 = vsub.f32 %v805_v57, %v823_v61  ;;  %v895_v3 = vadd.f32 %v877_v62, %v859_v58  ;;  %v586_v4 = vpop.f32.mrb[30].mxu0  ;;  %v777_v5 = vpop.f32.mrb[30].mxu1  ;;  %2023 = vmatprep.subr.bf16.mxu1 %v2274_v0  ;;  %2050 = vmatprep.subr.bf16.mxu0 %v2274_v0  ;;  %v908_v56 = vld [vmem:[%s3317_s5 + $0x48] sm:$0xff]  ;;  %v971_v57 = vld [vmem:[%s3318_s6 + $0x40] sm:$0xff]  ;;  %v910_v60 = vld [vmem:[%s3317_s5 + $0x58] sm:$0xff] }
 0x18f   : > { %v806_v6 = vmul.f32 %v586_v4, %v388_v63  ;;  %v860_v7 = vmul.f32 %v586_v4, %v406_v1  ;;  %v824_v8 = vmul.f32 %v777_v5, %v406_v1  ;;  %v878_v9 = vmul.f32 %v777_v5, %v388_v63  ;;  %v588_v10 = vpop.f32.mrb[31].mxu0  ;;  %v779_v11 = vpop.f32.mrb[31].mxu1  ;;  %v907_v58 = vld [vmem:[%s3317_s5 + $0x40] sm:$0xff]  ;;  %v973_v61 = vld [vmem:[%s3318_s6 + $0x50] sm:$0xff]  ;;  %v976_v63 = vld [vmem:[%s3318_s6 + $0x68] sm:$0xff] }
 0x190   : > { %v909_v62 = vld [vmem:[%s3317_s5 + $0x50] sm:$0xff]  ;;  %v912_v1 = vld [vmem:[%s3317_s5 + $0x68] sm:$0xff]  ;;  %v978_v4 = vld [vmem:[%s3318_s6 + $0x78] sm:$0xff] }
 0x191   : > { %v842_v14 = vsub.f32 %v806_v6, %v824_v8  ;;  %v896_v15 = vadd.f32 %v878_v9, %v860_v7  ;;  %v914_v5 = vld [vmem:[%s3317_s5 + $0x78] sm:$0xff]  ;;  %v977_v6 = vld [vmem:[%s3318_s6 + $0x70] sm:$0xff]  ;;  %v980_v8 = vld [vmem:[%s3318_s6 + $0x88] sm:$0xff] }
 0x192   : > { %v591_v16 = vpop.f32.mrb[32].mxu0  ;;  %v782_v17 = vpop.f32.mrb[32].mxu1  ;;  %v913_v7 = vld [vmem:[%s3317_s5 + $0x70] sm:$0xff]  ;;  %v916_v9 = vld [vmem:[%s3317_s5 + $0x88] sm:$0xff]  ;;  %v979_v10 = vld [vmem:[%s3318_s6 + $0x80] sm:$0xff] }
 0x193   : > { %v2024_v18 = vpack.c.bf16 %v896_v15, %v895_v3  ;;  %v2051_v19 = vpack.c.bf16 %v842_v14, %v841_v2  ;;  %v807_v20 = vmul.f32 %v591_v16, %v389_v12  ;;  %v861_v21 = vmul.f32 %v591_v16, %v407_v13  ;;  %v593_v22 = vpop.f32.mrb[33].mxu0  ;;  %v784_v23 = vpop.f32.mrb[33].mxu1  ;;  %v975_v2 = vld [vmem:[%s3318_s6 + $0x60] sm:$0xff]  ;;  %v981_v14 = vld [vmem:[%s3318_s6 + $0x90] sm:$0xff]  ;;  %v984_v16 = vld [vmem:[%s3318_s6 + $0xa8] sm:$0xff] }
 0x194   : > { %v825_v24 = vmul.f32 %v782_v17, %v407_v13  ;;  %v879_v25 = vmul.f32 %v782_v17, %v389_v12  ;;  %v911_v3 = vld [vmem:[%s3317_s5 + $0x60] sm:$0xff]  ;;  %v982_v12 = vld [vmem:[%s3318_s6 + $0x98] sm:$0xff]  ;;  %v917_v15 = vld [vmem:[%s3317_s5 + $0x90] sm:$0xff] }
 0x195   : > { %2025 = vmatpush1.bf16.msra.mxu1 %v2024_v18  ;;  %2052 = vmatpush1.bf16.msra.mxu0 %v2051_v19  ;;  %v915_v11 = vld [vmem:[%s3317_s5 + $0x80] sm:$0xff]  ;;  %v918_v13 = vld [vmem:[%s3317_s5 + $0x98] sm:$0xff]  ;;  %v920_v17 = vld [vmem:[%s3317_s5 + $0xa8] sm:$0xff] }
 0x196   : > { %v843_v28 = vsub.f32 %v807_v20, %v825_v24  ;;  %v897_v29 = vadd.f32 %v879_v25, %v861_v21  ;;  %v596_v30 = vpop.f32.mrb[34].mxu0  ;;  %v787_v31 = vpop.f32.mrb[34].mxu1  ;;  %2026 = vmatprep.subr.bf16.mxu1 %v2274_v0  ;;  %2053 = vmatprep.subr.bf16.mxu0 %v2274_v0  ;;  %v899_v0 = vld [vmem:[%s3317_s5] sm:$0xff]  ;;  %v986_v20 = vld [vmem:[%s3318_s6 + $0xb8] sm:$0xff]  ;;  %v985_v22 = vld [vmem:[%s3318_s6 + $0xb0] sm:$0xff] }
 0x197   : > { %v808_v32 = vmul.f32 %v596_v30, %v390_v26  ;;  %v862_v33 = vmul.f32 %v596_v30, %v408_v27  ;;  %v826_v34 = vmul.f32 %v787_v31, %v408_v27  ;;  %v880_v35 = vmul.f32 %v787_v31, %v390_v26  ;;  %v598_v36 = vpop.f32.mrb[35].mxu0  ;;  %v789_v37 = vpop.f32.mrb[35].mxu1  ;;  %v983_v18 = vld [vmem:[%s3318_s6 + $0xa0] sm:$0xff]  ;;  %v922_v21 = vld [vmem:[%s3317_s5 + $0xb8] sm:$0xff]  ;;  %v921_v23 = vld [vmem:[%s3317_s5 + $0xb0] sm:$0xff] }
 0x198   : > { %v919_v19 = vld [vmem:[%s3317_s5 + $0xa0] sm:$0xff]  ;;  %v988_v24 = vld [vmem:[%s3318_s6 + $0xc8] sm:$0xff]  ;;  %v989_v30 = vld [vmem:[%s3318_s6 + $0xd0] sm:$0xff] }
 0x199   : > { %v844_v38 = vsub.f32 %v808_v32, %v826_v34  ;;  %v898_v39 = vadd.f32 %v880_v35, %v862_v33  ;;  %v924_v25 = vld [vmem:[%s3317_s5 + $0xc8] sm:$0xff]  ;;  %v987_v26 = vld [vmem:[%s3318_s6 + $0xc0] sm:$0xff]  ;;  %v925_v31 = vld [vmem:[%s3317_s5 + $0xd0] sm:$0xff] }
 0x19a   : > { %v923_v27 = vld [vmem:[%s3317_s5 + $0xc0] sm:$0xff]  ;;  %v992_v32 = vld [vmem:[%s3318_s6 + $0xe8] sm:$0xff]  ;;  %v994_v36 = vld [vmem:[%s3318_s6 + $0xf8] sm:$0xff] }
 0x19b   : > { %v2027_v40 = vpack.c.bf16 %v898_v39, %v897_v29  ;;  %v2054_v41 = vpack.c.bf16 %v844_v38, %v843_v28  ;;  %v990_v28 = vld [vmem:[%s3318_s6 + $0xd8] sm:$0xff]  ;;  %v928_v33 = vld [vmem:[%s3317_s5 + $0xe8] sm:$0xff]  ;;  %v991_v34 = vld [vmem:[%s3318_s6 + $0xe0] sm:$0xff] }
 0x19c   : > { %v926_v29 = vld [vmem:[%s3317_s5 + $0xd8] sm:$0xff]  ;;  %v927_v35 = vld [vmem:[%s3317_s5 + $0xe0] sm:$0xff]  ;;  %v993_v38 = vld [vmem:[%s3318_s6 + $0xf0] sm:$0xff] }
 0x19d   : > { %2028 = vmatpush1.bf16.msra.mxu1 %v2027_v40  ;;  %2055 = vmatpush1.bf16.msra.mxu0 %v2054_v41  ;;  %v930_v37 = vld [vmem:[%s3317_s5 + $0xf8] sm:$0xff]  ;;  %v929_v39 = vld [vmem:[%s3317_s5 + $0xf0] sm:$0xff]  ;;  %v996_v40 = vld [vmem:[%s3318_s6 + $0x108] sm:$0xff] }
 0x19e   : > { %v932_v41 = vld [vmem:[%s3317_s5 + $0x108] sm:$0xff] }
 0x1a0   : > { %1189 = vmatmul.mubr.f32.vlgmr.msra.gmra.mrb[36].mxu1 %v963_v42  ;;  %1510 = vmatmul.mubr.f32.vlgmr.msra.gmra.mrb[36].mxu0 %v899_v0  ;;  %v995_v42 = vld [vmem:[%s3318_s6 + $0x100] sm:$0xff] }
 0x1a1   : > { %1836 = vmatprep.mubr.msk.f32.mxu1 %vm1027_vm0, %v966_v43  ;;  %1868 = vmatprep.mubr.msk.f32.mxu0 %vm1027_vm0, %v902_v44  ;;  %v931_v0 = vld [vmem:[%s3317_s5 + $0x100] sm:$0xff]  ;;  %v998_v43 = vld [vmem:[%s3318_s6 + $0x118] sm:$0xff] }
 0x1a2   : > { %v934_v44 = vld [vmem:[%s3317_s5 + $0x118] sm:$0xff] }
 0x1a4   : > { %1194 = vmatmul.mubr.f32.gmra.mrb[38].mxu1 %v965_v45  ;;  %1515 = vmatmul.mubr.f32.gmra.mrb[38].mxu0 %v901_v46  ;;  %v997_v45 = vld [vmem:[%s3318_s6 + $0x110] sm:$0xff] }
 0x1a5   : > { %1837 = vmatprep.mubr.msk.f32.mxu1 %vm1027_vm0, %v968_v47  ;;  %1869 = vmatprep.mubr.msk.f32.mxu0 %vm1027_vm0, %v904_v48  ;;  %v933_v46 = vld [vmem:[%s3317_s5 + $0x110] sm:$0xff]  ;;  %v1000_v47 = vld [vmem:[%s3318_s6 + $0x128] sm:$0xff] }
 0x1a6   : > { %v936_v48 = vld [vmem:[%s3317_s5 + $0x128] sm:$0xff] }
 0x1a8   : > { %1199 = vmatmul.mubr.f32.gmra.mrb[40].mxu1 %v967_v49  ;;  %1520 = vmatmul.mubr.f32.gmra.mrb[40].mxu0 %v903_v50  ;;  %v999_v49 = vld [vmem:[%s3318_s6 + $0x120] sm:$0xff] }
 0x1a9   : > { %1838 = vmatprep.mubr.msk.f32.mxu1 %vm1027_vm0, %v970_v51  ;;  %1870 = vmatprep.mubr.msk.f32.mxu0 %vm1027_vm0, %v906_v52  ;;  %v935_v50 = vld [vmem:[%s3317_s5 + $0x120] sm:$0xff]  ;;  %v1002_v51 = vld [vmem:[%s3318_s6 + $0x138] sm:$0xff] }
 0x1aa   : > { %v938_v52 = vld [vmem:[%s3317_s5 + $0x138] sm:$0xff] }
 0x1ac   : > { %1204 = vmatmul.mubr.f32.gmra.mrb[42].mxu1 %v969_v53  ;;  %1525 = vmatmul.mubr.f32.gmra.mrb[42].mxu0 %v905_v54  ;;  %v1001_v53 = vld [vmem:[%s3318_s6 + $0x130] sm:$0xff] }
 0x1ad   : > { %1839 = vmatprep.mubr.msk.f32.mxu1 %vm1027_vm0, %v972_v55  ;;  %1871 = vmatprep.mubr.msk.f32.mxu0 %vm1027_vm0, %v908_v56  ;;  %v937_v54 = vld [vmem:[%s3317_s5 + $0x130] sm:$0xff]  ;;  %v1004_v55 = vld [vmem:[%s3318_s6 + $0x148] sm:$0xff] }
 0x1ae   : > { %v940_v56 = vld [vmem:[%s3317_s5 + $0x148] sm:$0xff] }
 0x1b0   : > { %1209 = vmatmul.mubr.f32.gmra.mrb[44].mxu1 %v971_v57  ;;  %1530 = vmatmul.mubr.f32.gmra.mrb[44].mxu0 %v907_v58  ;;  %v1003_v57 = vld [vmem:[%s3318_s6 + $0x140] sm:$0xff] }
 0x1b1   : > { %1840 = vmatprep.mubr.msk.f32.mxu1 %vm1027_vm0, %v974_v59  ;;  %1872 = vmatprep.mubr.msk.f32.mxu0 %vm1027_vm0, %v910_v60  ;;  %v939_v58 = vld [vmem:[%s3317_s5 + $0x140] sm:$0xff]  ;;  %v1006_v59 = vld [vmem:[%s3318_s6 + $0x158] sm:$0xff] }
 0x1b2   : > { %v942_v60 = vld [vmem:[%s3317_s5 + $0x158] sm:$0xff] }
 0x1b4   : > { %1214 = vmatmul.mubr.f32.gmra.mrb[46].mxu1 %v973_v61  ;;  %1535 = vmatmul.mubr.f32.gmra.mrb[46].mxu0 %v909_v62  ;;  %v1005_v61 = vld [vmem:[%s3318_s6 + $0x150] sm:$0xff] }
 0x1b5   : > { %1841 = vmatprep.mubr.msk.f32.mxu1 %vm1027_vm0, %v976_v63  ;;  %1873 = vmatprep.mubr.msk.f32.mxu0 %vm1027_vm0, %v912_v1  ;;  %v941_v62 = vld [vmem:[%s3317_s5 + $0x150] sm:$0xff]  ;;  %v1008_v63 = vld [vmem:[%s3318_s6 + $0x168] sm:$0xff] }
 0x1b6   : > { %v944_v1 = vld [vmem:[%s3317_s5 + $0x168] sm:$0xff] }
 0x1b8   : > { %1219 = vmatmul.mubr.f32.gmra.mrb[48].mxu1 %v975_v2  ;;  %1540 = vmatmul.mubr.f32.gmra.mrb[48].mxu0 %v911_v3  ;;  %v1007_v2 = vld [vmem:[%s3318_s6 + $0x160] sm:$0xff] }
 0x1b9   : > { %1842 = vmatprep.mubr.msk.f32.mxu1 %vm1027_vm0, %v978_v4  ;;  %1874 = vmatprep.mubr.msk.f32.mxu0 %vm1027_vm0, %v914_v5  ;;  %v943_v3 = vld [vmem:[%s3317_s5 + $0x160] sm:$0xff]  ;;  %v1010_v4 = vld [vmem:[%s3318_s6 + $0x178] sm:$0xff] }
 0x1ba   : > { %v946_v5 = vld [vmem:[%s3317_s5 + $0x178] sm:$0xff] }
 0x1bc   : > { %1224 = vmatmul.mubr.f32.gmra.mrb[50].mxu1 %v977_v6  ;;  %1545 = vmatmul.mubr.f32.gmra.mrb[50].mxu0 %v913_v7  ;;  %v1009_v6 = vld [vmem:[%s3318_s6 + $0x170] sm:$0xff] }
 0x1bd   : > { %1843 = vmatprep.mubr.msk.f32.mxu1 %vm1027_vm0, %v980_v8  ;;  %1875 = vmatprep.mubr.msk.f32.mxu0 %vm1027_vm0, %v916_v9  ;;  %v945_v7 = vld [vmem:[%s3317_s5 + $0x170] sm:$0xff]  ;;  %v1012_v8 = vld [vmem:[%s3318_s6 + $0x188] sm:$0xff] }
 0x1be   : > { %v948_v9 = vld [vmem:[%s3317_s5 + $0x188] sm:$0xff] }
 0x1c0   : > { %1229 = vmatmul.mubr.f32.gmra.mrb[52].mxu1 %v979_v10  ;;  %1550 = vmatmul.mubr.f32.gmra.mrb[52].mxu0 %v915_v11  ;;  %v1011_v10 = vld [vmem:[%s3318_s6 + $0x180] sm:$0xff] }
 0x1c1   : > { %1844 = vmatprep.mubr.msk.f32.mxu1 %vm1027_vm0, %v982_v12  ;;  %1876 = vmatprep.mubr.msk.f32.mxu0 %vm1027_vm0, %v918_v13  ;;  %v947_v11 = vld [vmem:[%s3317_s5 + $0x180] sm:$0xff]  ;;  %v1014_v12 = vld [vmem:[%s3318_s6 + $0x198] sm:$0xff] }
 0x1c2   : > { %v950_v13 = vld [vmem:[%s3317_s5 + $0x198] sm:$0xff] }
 0x1c4   : > { %1234 = vmatmul.mubr.f32.gmra.mrb[54].mxu1 %v981_v14  ;;  %1555 = vmatmul.mubr.f32.gmra.mrb[54].mxu0 %v917_v15  ;;  %v1013_v14 = vld [vmem:[%s3318_s6 + $0x190] sm:$0xff] }
 0x1c5   : > { %1845 = vmatprep.mubr.msk.f32.mxu1 %vm1027_vm0, %v984_v16  ;;  %1877 = vmatprep.mubr.msk.f32.mxu0 %vm1027_vm0, %v920_v17  ;;  %v949_v15 = vld [vmem:[%s3317_s5 + $0x190] sm:$0xff]  ;;  %v1016_v16 = vld [vmem:[%s3318_s6 + $0x1a8] sm:$0xff] }
 0x1c6   : > { %v952_v17 = vld [vmem:[%s3317_s5 + $0x1a8] sm:$0xff] }
 0x1c8   : > { %1239 = vmatmul.mubr.f32.gmra.mrb[56].mxu1 %v983_v18  ;;  %1560 = vmatmul.mubr.f32.gmra.mrb[56].mxu0 %v919_v19  ;;  %v1015_v18 = vld [vmem:[%s3318_s6 + $0x1a0] sm:$0xff] }
 0x1c9   : > { %1846 = vmatprep.mubr.msk.f32.mxu1 %vm1027_vm0, %v986_v20  ;;  %1878 = vmatprep.mubr.msk.f32.mxu0 %vm1027_vm0, %v922_v21  ;;  %v951_v19 = vld [vmem:[%s3317_s5 + $0x1a0] sm:$0xff]  ;;  %v1018_v20 = vld [vmem:[%s3318_s6 + $0x1b8] sm:$0xff] }
 0x1ca   : > { %v954_v21 = vld [vmem:[%s3317_s5 + $0x1b8] sm:$0xff] }
 0x1cc   : > { %1244 = vmatmul.mubr.f32.gmra.mrb[58].mxu1 %v985_v22  ;;  %1565 = vmatmul.mubr.f32.gmra.mrb[58].mxu0 %v921_v23  ;;  %v1017_v22 = vld [vmem:[%s3318_s6 + $0x1b0] sm:$0xff] }
 0x1cd   : > { %1847 = vmatprep.mubr.msk.f32.mxu1 %vm1027_vm0, %v988_v24  ;;  %1879 = vmatprep.mubr.msk.f32.mxu0 %vm1027_vm0, %v924_v25  ;;  %v953_v23 = vld [vmem:[%s3317_s5 + $0x1b0] sm:$0xff]  ;;  %v1020_v24 = vld [vmem:[%s3318_s6 + $0x1c8] sm:$0xff] }
 0x1ce   : > { %v956_v25 = vld [vmem:[%s3317_s5 + $0x1c8] sm:$0xff] }
 0x1d0   : > { %1249 = vmatmul.mubr.f32.gmra.mrb[60].mxu1 %v987_v26  ;;  %1570 = vmatmul.mubr.f32.gmra.mrb[60].mxu0 %v923_v27  ;;  %v1019_v26 = vld [vmem:[%s3318_s6 + $0x1c0] sm:$0xff] }
 0x1d1   : > { %1848 = vmatprep.mubr.msk.f32.mxu1 %vm1027_vm0, %v990_v28  ;;  %1880 = vmatprep.mubr.msk.f32.mxu0 %vm1027_vm0, %v926_v29  ;;  %v955_v27 = vld [vmem:[%s3317_s5 + $0x1c0] sm:$0xff]  ;;  %v1022_v28 = vld [vmem:[%s3318_s6 + $0x1d8] sm:$0xff] }
 0x1d2   : > { %v958_v29 = vld [vmem:[%s3317_s5 + $0x1d8] sm:$0xff] }
 0x1d4   : > { %1254 = vmatmul.mubr.f32.gmra.mrb[62].mxu1 %v989_v30  ;;  %1575 = vmatmul.mubr.f32.gmra.mrb[62].mxu0 %v925_v31  ;;  %v1021_v30 = vld [vmem:[%s3318_s6 + $0x1d0] sm:$0xff] }
 0x1d5   : > { %1849 = vmatprep.mubr.msk.f32.mxu1 %vm1027_vm0, %v992_v32  ;;  %1881 = vmatprep.mubr.msk.f32.mxu0 %vm1027_vm0, %v928_v33  ;;  %v957_v31 = vld [vmem:[%s3317_s5 + $0x1d0] sm:$0xff]  ;;  %v1024_v32 = vld [vmem:[%s3318_s6 + $0x1e8] sm:$0xff] }
 0x1d6   : > { %v960_v33 = vld [vmem:[%s3317_s5 + $0x1e8] sm:$0xff] }
 0x1d8   : > { %1259 = vmatmul.mubr.f32.gmra.mrb[64].mxu1 %v991_v34  ;;  %1580 = vmatmul.mubr.f32.gmra.mrb[64].mxu0 %v927_v35  ;;  %v1023_v34 = vld [vmem:[%s3318_s6 + $0x1e0] sm:$0xff] }
 0x1d9   : > { %1850 = vmatprep.mubr.msk.f32.mxu1 %vm1027_vm0, %v994_v36  ;;  %1882 = vmatprep.mubr.msk.f32.mxu0 %vm1027_vm0, %v930_v37  ;;  %v959_v35 = vld [vmem:[%s3317_s5 + $0x1e0] sm:$0xff]  ;;  %v1026_v36 = vld [vmem:[%s3318_s6 + $0x1f8] sm:$0xff] }
 0x1da   : > { %v962_v37 = vld [vmem:[%s3317_s5 + $0x1f8] sm:$0xff] }
 0x1dc   : > { %1264 = vmatmul.mubr.f32.gmra.mrb[66].mxu1 %v993_v38  ;;  %1585 = vmatmul.mubr.f32.gmra.mrb[66].mxu0 %v929_v39  ;;  %v1025_v38 = vld [vmem:[%s3318_s6 + $0x1f0] sm:$0xff] }
 0x1dd   : > { %1851 = vmatprep.mubr.msk.f32.mxu1 %vm1027_vm0, %v996_v40  ;;  %1883 = vmatprep.mubr.msk.f32.mxu0 %vm1027_vm0, %v932_v41  ;;  %v961_v39 = vld [vmem:[%s3317_s5 + $0x1f0] sm:$0xff] }
 0x1e0   : > { %1269 = vmatmul.mubr.f32.gmra.mrb[68].mxu1 %v995_v42  ;;  %1590 = vmatmul.mubr.f32.gmra.mrb[68].mxu0 %v931_v0 }
 0x1e1   : > { %1852 = vmatprep.mubr.msk.f32.mxu1 %vm1027_vm0, %v998_v43  ;;  %1884 = vmatprep.mubr.msk.f32.mxu0 %vm1027_vm0, %v934_v44 }
 0x1e4   : > { %1274 = vmatmul.mubr.f32.gmra.mrb[70].mxu1 %v997_v45  ;;  %1595 = vmatmul.mubr.f32.gmra.mrb[70].mxu0 %v933_v46 }
 0x1e5   : > { %1853 = vmatprep.mubr.msk.f32.mxu1 %vm1027_vm0, %v1000_v47  ;;  %1885 = vmatprep.mubr.msk.f32.mxu0 %vm1027_vm0, %v936_v48 }
 0x1e8   : > { %1279 = vmatmul.mubr.f32.gmra.mrb[72].mxu1 %v999_v49  ;;  %1600 = vmatmul.mubr.f32.gmra.mrb[72].mxu0 %v935_v50 }
 0x1e9   : > { %1854 = vmatprep.mubr.msk.f32.mxu1 %vm1027_vm0, %v1002_v51  ;;  %1886 = vmatprep.mubr.msk.f32.mxu0 %vm1027_vm0, %v938_v52 }
 0x1ec   : > { %1284 = vmatmul.mubr.f32.gmra.mrb[74].mxu1 %v1001_v53  ;;  %1605 = vmatmul.mubr.f32.gmra.mrb[74].mxu0 %v937_v54 }
 0x1ed   : > { %1855 = vmatprep.mubr.msk.f32.mxu1 %vm1027_vm0, %v1004_v55  ;;  %1887 = vmatprep.mubr.msk.f32.mxu0 %vm1027_vm0, %v940_v56 }
 0x1f0   : > { %1289 = vmatmul.mubr.f32.gmra.mrb[76].mxu1 %v1003_v57  ;;  %1610 = vmatmul.mubr.f32.gmra.mrb[76].mxu0 %v939_v58 }
 0x1f1   : > { %1856 = vmatprep.mubr.msk.f32.mxu1 %vm1027_vm0, %v1006_v59  ;;  %1888 = vmatprep.mubr.msk.f32.mxu0 %vm1027_vm0, %v942_v60 }
 0x1f4   : > { %1294 = vmatmul.mubr.f32.gmra.mrb[78].mxu1 %v1005_v61  ;;  %1615 = vmatmul.mubr.f32.gmra.mrb[78].mxu0 %v941_v62 }
 0x1f5   : > { %1857 = vmatprep.mubr.msk.f32.mxu1 %vm1027_vm0, %v1008_v63  ;;  %1889 = vmatprep.mubr.msk.f32.mxu0 %vm1027_vm0, %v944_v1 }
 0x1f8   : > { %1299 = vmatmul.mubr.f32.gmra.mrb[80].mxu1 %v1007_v2  ;;  %1620 = vmatmul.mubr.f32.gmra.mrb[80].mxu0 %v943_v3 }
 0x1f9   : > { %1858 = vmatprep.mubr.msk.f32.mxu1 %vm1027_vm0, %v1010_v4  ;;  %1890 = vmatprep.mubr.msk.f32.mxu0 %vm1027_vm0, %v946_v5 }
 0x1fc   : > { %1304 = vmatmul.mubr.f32.gmra.mrb[82].mxu1 %v1009_v6  ;;  %1625 = vmatmul.mubr.f32.gmra.mrb[82].mxu0 %v945_v7 }
 0x1fd   : > { %1859 = vmatprep.mubr.msk.f32.mxu1 %vm1027_vm0, %v1012_v8  ;;  %1891 = vmatprep.mubr.msk.f32.mxu0 %vm1027_vm0, %v948_v9 }
 0x200   : > { %1309 = vmatmul.mubr.f32.gmra.mrb[84].mxu1 %v1011_v10  ;;  %1630 = vmatmul.mubr.f32.gmra.mrb[84].mxu0 %v947_v11 }
 0x201   : > { %1860 = vmatprep.mubr.msk.f32.mxu1 %vm1027_vm0, %v1014_v12  ;;  %1892 = vmatprep.mubr.msk.f32.mxu0 %vm1027_vm0, %v950_v13 }
 0x204   : > { %1314 = vmatmul.mubr.f32.gmra.mrb[86].mxu1 %v1013_v14  ;;  %1635 = vmatmul.mubr.f32.gmra.mrb[86].mxu0 %v949_v15 }
 0x205   : > { %1861 = vmatprep.mubr.msk.f32.mxu1 %vm1027_vm0, %v1016_v16  ;;  %1893 = vmatprep.mubr.msk.f32.mxu0 %vm1027_vm0, %v952_v17 }
 0x208   : > { %1319 = vmatmul.mubr.f32.gmra.mrb[88].mxu1 %v1015_v18  ;;  %1640 = vmatmul.mubr.f32.gmra.mrb[88].mxu0 %v951_v19 }
 0x209   : > { %1862 = vmatprep.mubr.msk.f32.mxu1 %vm1027_vm0, %v1018_v20  ;;  %1894 = vmatprep.mubr.msk.f32.mxu0 %vm1027_vm0, %v954_v21 }
 0x20c   : > { %1324 = vmatmul.mubr.f32.gmra.mrb[90].mxu1 %v1017_v22  ;;  %1645 = vmatmul.mubr.f32.gmra.mrb[90].mxu0 %v953_v23 }
 0x20d   : > { %1863 = vmatprep.mubr.msk.f32.mxu1 %vm1027_vm0, %v1020_v24  ;;  %1895 = vmatprep.mubr.msk.f32.mxu0 %vm1027_vm0, %v956_v25 }
 0x210   : > { %1329 = vmatmul.mubr.f32.gmra.mrb[92].mxu1 %v1019_v26  ;;  %1650 = vmatmul.mubr.f32.gmra.mrb[92].mxu0 %v955_v27 }
 0x211   : > { %1864 = vmatprep.mubr.msk.f32.mxu1 %vm1027_vm0, %v1022_v28  ;;  %1896 = vmatprep.mubr.msk.f32.mxu0 %vm1027_vm0, %v958_v29 }
 0x214   : > { %1334 = vmatmul.mubr.f32.gmra.mrb[94].mxu1 %v1021_v30  ;;  %1655 = vmatmul.mubr.f32.gmra.mrb[94].mxu0 %v957_v31 }
 0x215   : > { %1865 = vmatprep.mubr.msk.f32.mxu1 %vm1027_vm0, %v1024_v32  ;;  %1897 = vmatprep.mubr.msk.f32.mxu0 %vm1027_vm0, %v960_v33 }
 0x218   : > { %1339 = vmatmul.mubr.f32.gmra.mrb[96].mxu1 %v1023_v34  ;;  %1660 = vmatmul.mubr.f32.gmra.mrb[96].mxu0 %v959_v35 }
 0x219   : > { %1866 = vmatprep.mubr.msk.f32.mxu1 %vm1027_vm0, %v1026_v36  ;;  %1898 = vmatprep.mubr.msk.f32.mxu0 %vm1027_vm0, %v962_v37 }
 0x21c   : > { %1344 = vmatmul.mubr.f32.gmra.mrb[98].mxu1 %v1025_v38  ;;  %1665 = vmatmul.mubr.f32.gmra.mrb[98].mxu0 %v961_v39 }
 0x273   : > { %v1190_v40 = vpop.f32.mrb[36].mxu1  ;;  %v1511_v41 = vpop.f32.mrb[36].mxu0 }
 0x274   : > { %v1512_v42 = vadd.f32 %v1511_v41, %v1190_v40  ;;  %v1192_v0 = vpop.f32.mrb[37].mxu1  ;;  %v1513_v43 = vpop.f32.mrb[37].mxu0 }
 0x276   : > { %1670 = vst [vmem:[%s3221_s22] sm:$0xff] %v1512_v42 }
 0x277   : > { %v1195_v44 = vpop.f32.mrb[38].mxu1  ;;  %v1516_v45 = vpop.f32.mrb[38].mxu0 }
 0x278   : > { %v1517_v46 = vadd.f32 %v1516_v45, %v1195_v44  ;;  %v1197_v47 = vpop.f32.mrb[39].mxu1  ;;  %v1518_v48 = vpop.f32.mrb[39].mxu0 }
 0x27a   : > { %1671 = vst [vmem:[%s3221_s22 + $0x8] sm:$0xff] %v1517_v46 }
 0x27b   : > { %v1200_v49 = vpop.f32.mrb[40].mxu1  ;;  %v1521_v50 = vpop.f32.mrb[40].mxu0 }
 0x27c   : > { %v1522_v51 = vadd.f32 %v1521_v50, %v1200_v49  ;;  %v1202_v52 = vpop.f32.mrb[41].mxu1  ;;  %v1523_v53 = vpop.f32.mrb[41].mxu0 }
 0x27e   : > { %1672 = vst [vmem:[%s3221_s22 + $0x10] sm:$0xff] %v1522_v51 }
 0x27f   : > { %v1205_v54 = vpop.f32.mrb[42].mxu1  ;;  %v1526_v55 = vpop.f32.mrb[42].mxu0 }
 0x280   : > { %v1527_v56 = vadd.f32 %v1526_v55, %v1205_v54  ;;  %v1207_v57 = vpop.f32.mrb[43].mxu1  ;;  %v1528_v58 = vpop.f32.mrb[43].mxu0 }
 0x282   : > { %1673 = vst [vmem:[%s3221_s22 + $0x18] sm:$0xff] %v1527_v56 }
 0x283   : > { %v1210_v59 = vpop.f32.mrb[44].mxu1  ;;  %v1531_v60 = vpop.f32.mrb[44].mxu0 }
 0x284   : > { %v1532_v61 = vadd.f32 %v1531_v60, %v1210_v59  ;;  %v1212_v62 = vpop.f32.mrb[45].mxu1  ;;  %v1533_v63 = vpop.f32.mrb[45].mxu0 }
 0x286   : > { %1674 = vst [vmem:[%s3221_s22 + $0x20] sm:$0xff] %v1532_v61 }
 0x287   : > { %v1215_v1 = vpop.f32.mrb[46].mxu1  ;;  %v1536_v2 = vpop.f32.mrb[46].mxu0 }
 0x288   : > { %v1537_v3 = vadd.f32 %v1536_v2, %v1215_v1  ;;  %v1217_v4 = vpop.f32.mrb[47].mxu1  ;;  %v1538_v5 = vpop.f32.mrb[47].mxu0 }
 0x28a   : > { %1675 = vst [vmem:[%s3221_s22 + $0x28] sm:$0xff] %v1537_v3 }
 0x28b   : > { %v1220_v6 = vpop.f32.mrb[48].mxu1  ;;  %v1541_v7 = vpop.f32.mrb[48].mxu0 }
 0x28c   : > { %v1542_v8 = vadd.f32 %v1541_v7, %v1220_v6  ;;  %v1222_v9 = vpop.f32.mrb[49].mxu1  ;;  %v1543_v10 = vpop.f32.mrb[49].mxu0 }
 0x28e   : > { %1676 = vst [vmem:[%s3221_s22 + $0x30] sm:$0xff] %v1542_v8 }
 0x28f   : > { %v1225_v11 = vpop.f32.mrb[50].mxu1  ;;  %v1546_v12 = vpop.f32.mrb[50].mxu0 }
 0x290   : > { %v1547_v13 = vadd.f32 %v1546_v12, %v1225_v11  ;;  %v1227_v14 = vpop.f32.mrb[51].mxu1  ;;  %v1548_v15 = vpop.f32.mrb[51].mxu0 }
 0x292   : > { %1677 = vst [vmem:[%s3221_s22 + $0x38] sm:$0xff] %v1547_v13 }
 0x293   : > { %v1230_v16 = vpop.f32.mrb[52].mxu1  ;;  %v1551_v17 = vpop.f32.mrb[52].mxu0 }
 0x294   : > { %v1552_v18 = vadd.f32 %v1551_v17, %v1230_v16  ;;  %v1232_v19 = vpop.f32.mrb[53].mxu1  ;;  %v1553_v20 = vpop.f32.mrb[53].mxu0 }
 0x296   : > { %1678 = vst [vmem:[%s3221_s22 + $0x40] sm:$0xff] %v1552_v18 }
 0x297   : > { %v1235_v21 = vpop.f32.mrb[54].mxu1  ;;  %v1556_v22 = vpop.f32.mrb[54].mxu0 }
 0x298   : > { %v1557_v23 = vadd.f32 %v1556_v22, %v1235_v21  ;;  %v1237_v24 = vpop.f32.mrb[55].mxu1  ;;  %v1558_v25 = vpop.f32.mrb[55].mxu0 }
 0x29a   : > { %1679 = vst [vmem:[%s3221_s22 + $0x48] sm:$0xff] %v1557_v23 }
 0x29b   : > { %v1240_v26 = vpop.f32.mrb[56].mxu1  ;;  %v1561_v27 = vpop.f32.mrb[56].mxu0 }
 0x29c   : > { %v1562_v28 = vadd.f32 %v1561_v27, %v1240_v26  ;;  %v1242_v29 = vpop.f32.mrb[57].mxu1  ;;  %v1563_v30 = vpop.f32.mrb[57].mxu0 }
 0x29e   : > { %1680 = vst [vmem:[%s3221_s22 + $0x50] sm:$0xff] %v1562_v28 }
 0x29f   : > { %v1245_v31 = vpop.f32.mrb[58].mxu1  ;;  %v1566_v32 = vpop.f32.mrb[58].mxu0 }
 0x2a0   : > { %v1567_v33 = vadd.f32 %v1566_v32, %v1245_v31  ;;  %v1247_v34 = vpop.f32.mrb[59].mxu1  ;;  %v1568_v35 = vpop.f32.mrb[59].mxu0 }
 0x2a2   : > { %1681 = vst [vmem:[%s3221_s22 + $0x58] sm:$0xff] %v1567_v33 }
 0x2a3   : > { %v1250_v36 = vpop.f32.mrb[60].mxu1  ;;  %v1571_v37 = vpop.f32.mrb[60].mxu0 }
 0x2a4   : > { %v1572_v38 = vadd.f32 %v1571_v37, %v1250_v36  ;;  %v1252_v39 = vpop.f32.mrb[61].mxu1  ;;  %v1573_v40 = vpop.f32.mrb[61].mxu0 }
 0x2a6   : > { %1682 = vst [vmem:[%s3221_s22 + $0x60] sm:$0xff] %v1572_v38 }
 0x2a7   : > { %v1255_v41 = vpop.f32.mrb[62].mxu1  ;;  %v1576_v42 = vpop.f32.mrb[62].mxu0 }
 0x2a8   : > { %v1577_v0 = vadd.f32 %v1576_v42, %v1255_v41  ;;  %v1257_v43 = vpop.f32.mrb[63].mxu1  ;;  %v1578_v44 = vpop.f32.mrb[63].mxu0 }
 0x2aa   : > { %1683 = vst [vmem:[%s3221_s22 + $0x68] sm:$0xff] %v1577_v0 }
 0x2ab   : > { %v1260_v45 = vpop.f32.mrb[64].mxu1  ;;  %v1581_v46 = vpop.f32.mrb[64].mxu0 }
 0x2ac   : > { %v1582_v47 = vadd.f32 %v1581_v46, %v1260_v45  ;;  %v1262_v48 = vpop.f32.mrb[65].mxu1  ;;  %v1583_v49 = vpop.f32.mrb[65].mxu0 }
 0x2ae   : > { %1684 = vst [vmem:[%s3221_s22 + $0x70] sm:$0xff] %v1582_v47 }
 0x2af   : > { %v1265_v50 = vpop.f32.mrb[66].mxu1  ;;  %v1586_v51 = vpop.f32.mrb[66].mxu0 }
 0x2b0   : > { %v1587_v52 = vadd.f32 %v1586_v51, %v1265_v50  ;;  %v1267_v53 = vpop.f32.mrb[67].mxu1  ;;  %v1588_v54 = vpop.f32.mrb[67].mxu0 }
 0x2b2   : > { %1685 = vst [vmem:[%s3221_s22 + $0x78] sm:$0xff] %v1587_v52 }
 0x2b3   : > { %v1270_v55 = vpop.f32.mrb[68].mxu1  ;;  %v1591_v56 = vpop.f32.mrb[68].mxu0 }
 0x2b4   : > { %v1592_v57 = vadd.f32 %v1591_v56, %v1270_v55  ;;  %v1272_v58 = vpop.f32.mrb[69].mxu1  ;;  %v1593_v59 = vpop.f32.mrb[69].mxu0 }
 0x2b6   : > { %1686 = vst [vmem:[%s3221_s22 + $0x80] sm:$0xff] %v1592_v57 }
 0x2b7   : > { %v1275_v60 = vpop.f32.mrb[70].mxu1  ;;  %v1596_v61 = vpop.f32.mrb[70].mxu0 }
 0x2b8   : > { %v1597_v62 = vadd.f32 %v1596_v61, %v1275_v60  ;;  %v1277_v63 = vpop.f32.mrb[71].mxu1  ;;  %v1598_v1 = vpop.f32.mrb[71].mxu0 }
 0x2ba   : > { %1687 = vst [vmem:[%s3221_s22 + $0x88] sm:$0xff] %v1597_v62 }
 0x2bb   : > { %v1280_v2 = vpop.f32.mrb[72].mxu1  ;;  %v1601_v3 = vpop.f32.mrb[72].mxu0 }
 0x2bc   : > { %v1602_v4 = vadd.f32 %v1601_v3, %v1280_v2  ;;  %v1282_v5 = vpop.f32.mrb[73].mxu1  ;;  %v1603_v6 = vpop.f32.mrb[73].mxu0 }
 0x2be   : > { %1688 = vst [vmem:[%s3221_s22 + $0x90] sm:$0xff] %v1602_v4 }
 0x2bf   : > { %v1285_v7 = vpop.f32.mrb[74].mxu1  ;;  %v1606_v8 = vpop.f32.mrb[74].mxu0 }
 0x2c0   : > { %v1607_v9 = vadd.f32 %v1606_v8, %v1285_v7  ;;  %v1287_v10 = vpop.f32.mrb[75].mxu1  ;;  %v1608_v11 = vpop.f32.mrb[75].mxu0 }
 0x2c2   : > { %1689 = vst [vmem:[%s3221_s22 + $0x98] sm:$0xff] %v1607_v9 }
 0x2c3   : > { %v1290_v12 = vpop.f32.mrb[76].mxu1  ;;  %v1611_v13 = vpop.f32.mrb[76].mxu0 }
 0x2c4   : > { %v1612_v14 = vadd.f32 %v1611_v13, %v1290_v12  ;;  %v1292_v15 = vpop.f32.mrb[77].mxu1  ;;  %v1613_v16 = vpop.f32.mrb[77].mxu0 }
 0x2c6   : > { %1690 = vst [vmem:[%s3221_s22 + $0xa0] sm:$0xff] %v1612_v14 }
 0x2c7   : > { %v1295_v17 = vpop.f32.mrb[78].mxu1  ;;  %v1616_v18 = vpop.f32.mrb[78].mxu0 }
 0x2c8   : > { %v1617_v19 = vadd.f32 %v1616_v18, %v1295_v17  ;;  %v1297_v20 = vpop.f32.mrb[79].mxu1  ;;  %v1618_v21 = vpop.f32.mrb[79].mxu0 }
 0x2ca   : > { %1691 = vst [vmem:[%s3221_s22 + $0xa8] sm:$0xff] %v1617_v19 }
 0x2cb   : > { %v1300_v22 = vpop.f32.mrb[80].mxu1  ;;  %v1621_v23 = vpop.f32.mrb[80].mxu0 }
 0x2cc   : > { %v1622_v24 = vadd.f32 %v1621_v23, %v1300_v22  ;;  %v1302_v25 = vpop.f32.mrb[81].mxu1  ;;  %v1623_v26 = vpop.f32.mrb[81].mxu0 }
 0x2ce   : > { %1692 = vst [vmem:[%s3221_s22 + $0xb0] sm:$0xff] %v1622_v24 }
 0x2cf   : > { %v1305_v27 = vpop.f32.mrb[82].mxu1  ;;  %v1626_v28 = vpop.f32.mrb[82].mxu0 }
 0x2d0   : > { %v1627_v29 = vadd.f32 %v1626_v28, %v1305_v27  ;;  %v1307_v30 = vpop.f32.mrb[83].mxu1  ;;  %v1628_v31 = vpop.f32.mrb[83].mxu0 }
 0x2d2   : > { %1693 = vst [vmem:[%s3221_s22 + $0xb8] sm:$0xff] %v1627_v29 }
 0x2d3   : > { %v1310_v32 = vpop.f32.mrb[84].mxu1  ;;  %v1631_v33 = vpop.f32.mrb[84].mxu0 }
 0x2d4   : > { %v1632_v34 = vadd.f32 %v1631_v33, %v1310_v32  ;;  %v1312_v35 = vpop.f32.mrb[85].mxu1  ;;  %v1633_v36 = vpop.f32.mrb[85].mxu0 }
 0x2d6   : > { %1694 = vst [vmem:[%s3221_s22 + $0xc0] sm:$0xff] %v1632_v34 }
 0x2d7   : > { %v1315_v37 = vpop.f32.mrb[86].mxu1  ;;  %v1636_v38 = vpop.f32.mrb[86].mxu0 }
 0x2d8   : > { %v1637_v39 = vadd.f32 %v1636_v38, %v1315_v37  ;;  %v1317_v40 = vpop.f32.mrb[87].mxu1  ;;  %v1638_v41 = vpop.f32.mrb[87].mxu0 }
 0x2da   : > { %1695 = vst [vmem:[%s3221_s22 + $0xc8] sm:$0xff] %v1637_v39 }
 0x2db   : > { %v1320_v42 = vpop.f32.mrb[88].mxu1  ;;  %v1641_v0 = vpop.f32.mrb[88].mxu0 }
 0x2dc   : > { %v1642_v43 = vadd.f32 %v1641_v0, %v1320_v42  ;;  %v1322_v44 = vpop.f32.mrb[89].mxu1  ;;  %v1643_v45 = vpop.f32.mrb[89].mxu0 }
 0x2de   : > { %1696 = vst [vmem:[%s3221_s22 + $0xd0] sm:$0xff] %v1642_v43 }
 0x2df   : > { %v1325_v46 = vpop.f32.mrb[90].mxu1  ;;  %v1646_v47 = vpop.f32.mrb[90].mxu0 }
 0x2e0   : > { %v1647_v48 = vadd.f32 %v1646_v47, %v1325_v46  ;;  %v1327_v49 = vpop.f32.mrb[91].mxu1  ;;  %v1648_v50 = vpop.f32.mrb[91].mxu0 }
 0x2e2   : > { %1697 = vst [vmem:[%s3221_s22 + $0xd8] sm:$0xff] %v1647_v48 }
 0x2e3   : > { %v1330_v51 = vpop.f32.mrb[92].mxu1  ;;  %v1651_v52 = vpop.f32.mrb[92].mxu0 }
 0x2e4   : > { %v1652_v53 = vadd.f32 %v1651_v52, %v1330_v51  ;;  %v1332_v54 = vpop.f32.mrb[93].mxu1  ;;  %v1653_v55 = vpop.f32.mrb[93].mxu0 }
 0x2e6   : > { %1698 = vst [vmem:[%s3221_s22 + $0xe0] sm:$0xff] %v1652_v53 }
 0x2e7   : > { %v1335_v56 = vpop.f32.mrb[94].mxu1  ;;  %v1656_v57 = vpop.f32.mrb[94].mxu0 }
 0x2e8   : > { %v1657_v58 = vadd.f32 %v1656_v57, %v1335_v56  ;;  %v1337_v59 = vpop.f32.mrb[95].mxu1  ;;  %v1658_v60 = vpop.f32.mrb[95].mxu0 }
 0x2ea   : > { %1699 = vst [vmem:[%s3221_s22 + $0xe8] sm:$0xff] %v1657_v58 }
 0x2eb   : > { %v1340_v61 = vpop.f32.mrb[96].mxu1  ;;  %v1661_v62 = vpop.f32.mrb[96].mxu0 }
 0x2ec   : > { %v1662_v63 = vadd.f32 %v1661_v62, %v1340_v61  ;;  %v1342_v1 = vpop.f32.mrb[97].mxu1  ;;  %v1663_v2 = vpop.f32.mrb[97].mxu0 }
 0x2ee   : > { %1700 = vst [vmem:[%s3221_s22 + $0xf0] sm:$0xff] %v1662_v63 }
 0x2ef   : > { %v1345_v3 = vpop.f32.mrb[98].mxu1  ;;  %v1666_v4 = vpop.f32.mrb[98].mxu0 }
 0x2f0   : > { %v1667_v5 = vadd.f32 %v1666_v4, %v1345_v3  ;;  %v1347_v6 = vpop.f32.mrb[99].mxu1  ;;  %v1668_v7 = vpop.f32.mrb[99].mxu0 }
 0x2f2   : > { %1701 = vst [vmem:[%s3221_s22 + $0xf8] sm:$0xff] %v1667_v5 }
 0x2f3   : > { %2200 = shalt.err (!%p2197_p6)
}
 0x2f4   : > { %s2201_s21 = scalar_lea.hbm %s3259_s8, 4096  ;;  %s2205_s22 = scalar_lea.hbm %s3319_s7, 8192 }
 0x2f5   : > { %p2202_p7 = scmp.ne.s32.totalorder %s3259_s8, %s2201_s21  ;;  %p2206_p0 = scmp.lt.u32.totalorder %s3259_s8, %s3319_s7 }
 0x2f6   : > { %p2207_p2 = scmp.lt.u32.totalorder %s2205_s22, %s2201_s21  ;;  %p2209_p8 = scmp.lt.u32.totalorder %s2201_s21, %s3259_s8 }
 0x2f7   : > { %p2203_p9 = pnand %p2202_p7, %p3331_p10 }
 0x2f8   : > { %p2208_p4 = por %p2207_p2, %p2206_p0 }
 0x2f9   : > { %p2204_p12 = pneg %p2203_p9 }
 0x2fa   : > { %p2210_p11 = por %p2209_p8, %p2208_p4 }
 0x2fc   : > { %p2211_p13 = pnand %p2210_p11, %p2204_p12 }
 0x2fe   : > { %2214 = shalt.err (!%p2211_p13)
}
 0x2ff   : > { %s2276_s16 = smov 128   ;;  %s2277_s10 = smov 8  }
 0x300   : > { %2092 = dma.vmem_to_hbm [thread:$0]  (%p3331_p10), %s3261_s30, 4096, %s3259_s8, %s3266_s27, %s2276_s16, %s2276_s16, %s2277_s10  }
 0x301 PF: > { %p2104_p1 = scmp.ge.s32.totalorder %s2269_s29, 2  ;;  %s1732_s12 = sand.u32 1, %s2249_s24  }
 0x302   : > { %p3332_p3 = scmp.ne.s32.totalorder %s3325_s13, 0  ;;  %s1733_s17 = scalar_lea.sflag [#allocation4], %s1732_s12 }
 0x304   : > { %p2099_p5 = pnand %p2104_p1, %p3332_p3 }
 0x306   : > { %2244 = dma.done.wait (!%p2099_p5), %s1733_s17, 4096  }
 0x307   : > { %2246 = vsyncadd (!%p2099_p5), %s1733_s17, 4294963200  ;;  %s21_s29 = sadd.s32 1, %s2269_s29   ;;  %s3333_s24 = smov %s2253_s25 }
 0x308   : > { %p18_p6 = scmp.ge.s32.totalorder %s21_s29, 4   ;;  %s3334_s25 = smov %s2257_s26 }
 0x309   : > { %s3335_s26 = smov %s2371_s14  ;;  %s3336_s27 = smov %s2265_s28 }
 0x30a   : > { %s3337_s28 = smov %s3339_s9  ;;  %20 = sbr.rel (!%p18_p6) target bundleno = 5 (0x5), region = 92 }
 0x311   :  { %1738 = vsyncpa [#allocation3], 1 }
 0x312   :  { %1740 = vsyncpa [#allocation3 + $0x1], 1 }
 0x313   :  { %1741 = vsyncpa [#allocation4], 1 }
 0x314   :  { %1743 = vsyncpa [#allocation4 + $0x1], 1 }

</bundles_post_ra>
